<compile_context>
chip_gen: v6e
topology: v6e:2x2x1
jax: 0.10.0
libtpu: 0.0.40
codegen_flags: <defaults>
</compile_context>

<pallas_src>
import functools

import jax
import jax.numpy as jnp
from jax.experimental import pallas as pl
from jax.experimental.pallas import tpu as pltpu

BN_EPS = 1e-5


def _diff_features_kernel(x1_ref, x2_ref, coords_ref, w1_ref, b1_ref,
                          gamma_ref, beta_ref, w2_ref, b2_ref, out_ref,
                          xpad_scr, hpad_scr, p1_scr, p2_scr,
                          *, n, c, h, w, cout, halo):
    # x1_ref/x2_ref : (N, C, H*W)            inputs (free NCHW reshape)
    # coords_ref    : (2, S) int32           row/col coordinate per flat pixel
    # w1_ref        : (Cout, 9*Cin)          repacked conv1 weights
    # w2_ref        : (Cout, 9*Cout)         repacked conv2 weights
    # b1/gamma/beta/b2 : (Cout, 1)
    # out_ref       : (N, Cout, H*W)
    # xpad_scr      : (2*C,  halo + S + halo) concat(x1,x2) with flat halo
    # hpad_scr      : (Cout, halo + S + halo) BN output with flat halo
    # p1_scr/p2_scr : (9*2*C, S) / (9*Cout, S) im2col patch matrices
    hw = h * w
    s = n * hw                   # flattened (N, H, W) extent == lane axis
    cin = 2 * c

    # ---- fused concat(x1, x2) into the flat halo'd buffer -----------------
    # Halo lanes stay uninitialized: every lane that reads them corresponds to
    # an out-of-image tap and is masked below, so no zero-fill pass is needed.
    for img in range(n):
        start = halo + img * hw
        xpad_scr[0:c, start:start + hw] = x1_ref[img]
        xpad_scr[c:cin, start:start + hw] = x2_ref[img]

    # ---- border masks (shared by both convs) ------------------------------
    yc = coords_ref[0:1, :]                      # (1, S), row index in [0, H)
    xc = coords_ref[1:2, :]                      # (1, S), col index in [0, W)
    taps = [(dy, dx) for dy in (-1, 0, 1) for dx in (-1, 0, 1)]
    masks = {}
    for dy, dx in taps:
        if (dy, dx) != (0, 0):
            masks[(dy, dx)] = ((yc + dy >= 0) & (yc + dy < h) &
                               (xc + dx >= 0) & (xc + dx < w))

    def build_patch(pad_scr, patch_scr, nch):
        # patch row t*nch + ch = channel `ch` of tap t, tap-major order that
        # matches the repacked (Cout, 9*nch) weight columns.
        for t, (dy, dx) in enumerate(taps):
            off = dy * w + dx
            win = pad_scr[:, halo + off:halo + off + s]         # (nch, S)
            if (dy, dx) != (0, 0):
                win = jnp.where(masks[(dy, dx)], win, 0.0)
            patch_scr[t * nch:(t + 1) * nch, :] = win
        return patch_scr[...]                                   # (9*nch, S)

    # ---- conv1 (3x3, pad=1): single im2col matmul + bias + ReLU -----------
    patch1 = build_patch(xpad_scr, p1_scr, cin)
    h1 = jnp.dot(w1_ref[...], patch1,
                 preferred_element_type=jnp.float32)            # (Cout, S)
    h1 = jnp.maximum(h1 + b1_ref[...], 0.0)

    # ---- BatchNorm2d, training-mode stats over (N, H, W) = lane axis ------
    mean = jnp.mean(h1, axis=1, keepdims=True)                  # (Cout, 1)
    diff = h1 - mean
    var = jnp.mean(diff * diff, axis=1, keepdims=True)          # biased var
    h_bn = diff * jax.lax.rsqrt(var + BN_EPS) * gamma_ref[...] + beta_ref[...]

    # ---- conv2 (3x3, pad=1): single im2col matmul + bias + ReLU -----------
    hpad_scr[:, halo:halo + s] = h_bn                           # dense store
    patch2 = build_patch(hpad_scr, p2_scr, cout)
    h2 = jnp.dot(w2_ref[...], patch2,
                 preferred_element_type=jnp.float32)            # (Cout, S)
    out = jnp.maximum(h2 + b2_ref[...], 0.0)

    # ---- lane-dense output: (N, Cout, H*W) slabs, 256 lanes wide ----------
    for img in range(n):
        out_ref[img, :, :] = out[:, img * hw:(img + 1) * hw].astype(out_ref.dtype)


def changeformer_diff_features(x1_nchw, x2_nchw, params):
    """x1_nchw, x2_nchw: (N, C, H, W). Returns (N, Cout, H, W)."""
    N, C, H, W = x1_nchw.shape
    Cout = params["w1"].shape[-1]
    HW, S = H * W, N * H * W
    HALO = ((W + 1 + 127) // 128) * 128      # flat halo >= W+1, lane aligned

    # Free (metadata-only) reshapes: NCHW -> (N, C, H*W). No concat/pad passes.
    x1r = x1_nchw.reshape(N, C, HW).astype(jnp.float32)
    x2r = x2_nchw.reshape(N, C, HW).astype(jnp.float32)

    # Flat (row, col) coordinates for border masking, flat order n, y, x.
    yy = jax.lax.broadcasted_iota(jnp.int32, (N, H, W), 1).reshape(1, S)
    xx = jax.lax.broadcasted_iota(jnp.int32, (N, H, W), 2).reshape(1, S)
    coords = jnp.concatenate([yy, xx], axis=0)                   # (2, S)

    def repack(w_hwio):
        # HWIO (3, 3, ci, co) -> (co, 9*ci); columns tap-major, channel-minor.
        kh, kw, ci, co = w_hwio.shape
        return jnp.transpose(w_hwio.reshape(kh * kw, ci, co),
                             (2, 0, 1)).reshape(co, kh * kw * ci)

    w1r = repack(params["w1"]).astype(jnp.float32)               # (Cout, 9*Cin)
    w2r = repack(params["w2"]).astype(jnp.float32)               # (Cout, 9*Cout)
    col = lambda p: p.reshape(Cout, 1).astype(jnp.float32)
    b1c, b2c = col(params["b1"]), col(params["b2"])
    gam, bet = col(params["gamma"]), col(params["beta"])

    kernel = functools.partial(_diff_features_kernel, n=N, c=C, h=H, w=W,
                               cout=Cout, halo=HALO)
    out = pl.pallas_call(
        kernel,
        out_shape=jax.ShapeDtypeStruct((N, Cout, HW), jnp.float32),
        scratch_shapes=[
            pltpu.VMEM((2 * C, HALO + S + HALO), jnp.float32),   # concat + halo
            pltpu.VMEM((Cout, HALO + S + HALO), jnp.float32),    # BN out + halo
            pltpu.VMEM((9 * 2 * C, S), jnp.float32),             # im2col conv1
            pltpu.VMEM((9 * Cout, S), jnp.float32),              # im2col conv2
        ],
    )(x1r, x2r, coords, w1r, b1c, gam, bet, w2r, b2c)

    # Free reshape back to NCHW (flat order is already n, c, y, x).
    return out.reshape(N, Cout, H, W)


def _reference(x1_nchw, x2_nchw, params):
    """Pure-JAX reference reproducing the PyTorch forward (NCHW)."""
    x = jnp.concatenate([x1_nchw, x2_nchw], axis=1)
    w1 = jnp.transpose(params["w1"], (3, 2, 0, 1))               # HWIO -> OIHW
    y = jax.lax.conv_general_dilated(
        x, w1, (1, 1), ((1, 1), (1, 1)),
        dimension_numbers=("NCHW", "OIHW", "NCHW"))
    y = y + params["b1"].reshape(1, -1, 1, 1)
    y = jnp.maximum(y, 0.0)
    mean = jnp.mean(y, axis=(0, 2, 3), keepdims=True)
    var = jnp.mean((y - mean) ** 2, axis=(0, 2, 3), keepdims=True)
    y = (y - mean) * jax.lax.rsqrt(var + BN_EPS) * params["gamma"].reshape(1, -1, 1, 1) \
        + params["beta"].reshape(1, -1, 1, 1)
    w2 = jnp.transpose(params["w2"], (3, 2, 0, 1))
    y = jax.lax.conv_general_dilated(
        y, w2, (1, 1), ((1, 1), (1, 1)),
        dimension_numbers=("NCHW", "OIHW", "NCHW"))
    y = y + params["b2"].reshape(1, -1, 1, 1)
    return jnp.maximum(y, 0.0)


if __name__ == "__main__":
    key = jax.random.PRNGKey(0)
    k1, k2, kw1, kb1, kw2, kb2 = jax.random.split(key, 6)

    N, C, H, W = 2, 4, 16, 16          # each input: (2, 4, 16, 16)
    Cin, Cout = 2 * C, 8               # concat -> in_channels=8, out_channels=8

    x1 = jax.random.normal(k1, (N, C, H, W), jnp.float32)
    x2 = jax.random.normal(k2, (N, C, H, W), jnp.float32)

    # Deterministic synthetic parameters (HWIO conv weights, per-channel BN).
    params = {
        "w1": 0.1 * jax.random.normal(kw1, (3, 3, Cin, Cout), jnp.float32),
        "b1": 0.1 * jax.random.normal(kb1, (1, Cout), jnp.float32),
        "gamma": jnp.ones((1, Cout), jnp.float32),    # BatchNorm2d default init
        "beta": jnp.zeros((1, Cout), jnp.float32),
        "w2": 0.1 * jax.random.normal(kw2, (3, 3, Cout, Cout), jnp.float32),
        "b2": 0.1 * jax.random.normal(kb2, (1, Cout), jnp.float32),
    }

    out = changeformer_diff_features(x1, x2, params)
    jax.block_until_ready(out)

    ref = _reference(x1, x2, params)
    assert out.shape == (N, Cout, H, W), out.shape
    assert jnp.allclose(out, ref, rtol=1e-4, atol=1e-4), \
        float(jnp.max(jnp.abs(out - ref)))

    print("KERNEL_OK")
</pallas_src>

<mosaic_0001>
module attributes {stable_mosaic.version = 11 : i64} {
  func.func @_diff_features_kernel(%arg0: memref<2x4x256xf32, #tpu.memory_space<vmem>>, %arg1: memref<2x4x256xf32, #tpu.memory_space<vmem>>, %arg2: memref<2x512xi32, #tpu.memory_space<vmem>>, %arg3: memref<8x72xf32, #tpu.memory_space<vmem>>, %arg4: memref<8x1xf32, #tpu.memory_space<vmem>>, %arg5: memref<8x1xf32, #tpu.memory_space<vmem>>, %arg6: memref<8x1xf32, #tpu.memory_space<vmem>>, %arg7: memref<8x72xf32, #tpu.memory_space<vmem>>, %arg8: memref<8x1xf32, #tpu.memory_space<vmem>>, %arg9: memref<2x8x256xf32, #tpu.memory_space<vmem>>, %arg10: memref<8x768xf32, #tpu.memory_space<vmem>>, %arg11: memref<8x768xf32, #tpu.memory_space<vmem>>, %arg12: memref<72x512xf32, #tpu.memory_space<vmem>>, %arg13: memref<72x512xf32, #tpu.memory_space<vmem>>) attributes {dimension_semantics = [], scalar_prefetch = 0 : i64, scratch_operands = 4 : i64, tpu.core_type = #tpu.core_type<tc>} {
    %c0 = arith.constant 0 : index
    %c0_0 = arith.constant 0 : index
    %c0_1 = arith.constant 0 : index
    %0 = vector.load %arg0[%c0, %c0_0, %c0_1] : memref<2x4x256xf32, #tpu.memory_space<vmem>>, vector<1x4x256xf32>
    %1 = vector.shape_cast %0 : vector<1x4x256xf32> to vector<4x256xf32>
    %c0_2 = arith.constant 0 : index
    %c128 = arith.constant 128 : index
    %2 = vector.load %arg10[%c0_2, %c128] : memref<8x768xf32, #tpu.memory_space<vmem>>, vector<4x256xf32>
    tpu.vector_store %arg10[%c0_2, %c128], %1 {strides = array<i32>} : memref<8x768xf32, #tpu.memory_space<vmem>>, vector<4x256xf32>,
    %c0_3 = arith.constant 0 : index
    %c0_4 = arith.constant 0 : index
    %c0_5 = arith.constant 0 : index
    %3 = vector.load %arg1[%c0_3, %c0_4, %c0_5] : memref<2x4x256xf32, #tpu.memory_space<vmem>>, vector<1x4x256xf32>
    %4 = vector.shape_cast %3 : vector<1x4x256xf32> to vector<4x256xf32>
    %c4 = arith.constant 4 : index
    %c128_6 = arith.constant 128 : index
    %5 = vector.load %arg10[%c4, %c128_6] : memref<8x768xf32, #tpu.memory_space<vmem>>, vector<4x256xf32>
    tpu.vector_store %arg10[%c4, %c128_6], %4 {strides = array<i32>} : memref<8x768xf32, #tpu.memory_space<vmem>>, vector<4x256xf32>,
    %c1 = arith.constant 1 : index
    %c0_7 = arith.constant 0 : index
    %c0_8 = arith.constant 0 : index
    %6 = vector.load %arg0[%c1, %c0_7, %c0_8] : memref<2x4x256xf32, #tpu.memory_space<vmem>>, vector<1x4x256xf32>
    %7 = vector.shape_cast %6 : vector<1x4x256xf32> to vector<4x256xf32>
    %c0_9 = arith.constant 0 : index
    %c384 = arith.constant 384 : index
    %8 = vector.load %arg10[%c0_9, %c384] : memref<8x768xf32, #tpu.memory_space<vmem>>, vector<4x256xf32>
    tpu.vector_store %arg10[%c0_9, %c384], %7 {strides = array<i32>} : memref<8x768xf32, #tpu.memory_space<vmem>>, vector<4x256xf32>,
    %c1_10 = arith.constant 1 : index
    %c0_11 = arith.constant 0 : index
    %c0_12 = arith.constant 0 : index
    %9 = vector.load %arg1[%c1_10, %c0_11, %c0_12] : memref<2x4x256xf32, #tpu.memory_space<vmem>>, vector<1x4x256xf32>
    %10 = vector.shape_cast %9 : vector<1x4x256xf32> to vector<4x256xf32>
    %c4_13 = arith.constant 4 : index
    %c384_14 = arith.constant 384 : index
    %11 = vector.load %arg10[%c4_13, %c384_14] : memref<8x768xf32, #tpu.memory_space<vmem>>, vector<4x256xf32>
    tpu.vector_store %arg10[%c4_13, %c384_14], %10 {strides = array<i32>} : memref<8x768xf32, #tpu.memory_space<vmem>>, vector<4x256xf32>,
    %c0_15 = arith.constant 0 : index
    %c0_16 = arith.constant 0 : index
    %12 = vector.load %arg2[%c0_15, %c0_16] : memref<2x512xi32, #tpu.memory_space<vmem>>, vector<1x512xi32>
    %c1_17 = arith.constant 1 : index
    %c0_18 = arith.constant 0 : index
    %13 = vector.load %arg2[%c1_17, %c0_18] : memref<2x512xi32, #tpu.memory_space<vmem>>, vector<1x512xi32>
    %c-1_i32 = arith.constant -1 : i32
    %14 = vector.broadcast %c-1_i32 : i32 to vector<1x512xi32>
    %15 = arith.addi %12, %14 : vector<1x512xi32>
    %c0_i32 = arith.constant 0 : i32
    %16 = vector.broadcast %c0_i32 : i32 to vector<1x512xi32>
    %17 = arith.cmpi sge, %15, %16 : vector<1x512xi32>
    %c-1_i32_19 = arith.constant -1 : i32
    %18 = vector.broadcast %c-1_i32_19 : i32 to vector<1x512xi32>
    %19 = arith.addi %12, %18 : vector<1x512xi32>
    %c16_i32 = arith.constant 16 : i32
    %20 = vector.broadcast %c16_i32 : i32 to vector<1x512xi32>
    %21 = arith.cmpi slt, %19, %20 : vector<1x512xi32>
    %22 = arith.andi %17, %21 : vector<1x512xi1>
    %c-1_i32_20 = arith.constant -1 : i32
    %23 = vector.broadcast %c-1_i32_20 : i32 to vector<1x512xi32>
    %24 = arith.addi %13, %23 : vector<1x512xi32>
    %c0_i32_21 = arith.constant 0 : i32
    %25 = vector.broadcast %c0_i32_21 : i32 to vector<1x512xi32>
    %26 = arith.cmpi sge, %24, %25 : vector<1x512xi32>
    %27 = arith.andi %22, %26 : vector<1x512xi1>
    %c-1_i32_22 = arith.constant -1 : i32
    %28 = vector.broadcast %c-1_i32_22 : i32 to vector<1x512xi32>
    %29 = arith.addi %13, %28 : vector<1x512xi32>
    %c16_i32_23 = arith.constant 16 : i32
    %30 = vector.broadcast %c16_i32_23 : i32 to vector<1x512xi32>
    %31 = arith.cmpi slt, %29, %30 : vector<1x512xi32>
    %32 = arith.andi %27, %31 : vector<1x512xi1>
    %c-1_i32_24 = arith.constant -1 : i32
    %33 = vector.broadcast %c-1_i32_24 : i32 to vector<1x512xi32>
    %34 = arith.addi %12, %33 : vector<1x512xi32>
    %c0_i32_25 = arith.constant 0 : i32
    %35 = vector.broadcast %c0_i32_25 : i32 to vector<1x512xi32>
    %36 = arith.cmpi sge, %34, %35 : vector<1x512xi32>
    %c-1_i32_26 = arith.constant -1 : i32
    %37 = vector.broadcast %c-1_i32_26 : i32 to vector<1x512xi32>
    %38 = arith.addi %12, %37 : vector<1x512xi32>
    %c16_i32_27 = arith.constant 16 : i32
    %39 = vector.broadcast %c16_i32_27 : i32 to vector<1x512xi32>
    %40 = arith.cmpi slt, %38, %39 : vector<1x512xi32>
    %41 = arith.andi %36, %40 : vector<1x512xi1>
    %c0_i32_28 = arith.constant 0 : i32
    %42 = vector.broadcast %c0_i32_28 : i32 to vector<1x512xi32>
    %43 = arith.addi %13, %42 : vector<1x512xi32>
    %c0_i32_29 = arith.constant 0 : i32
    %44 = vector.broadcast %c0_i32_29 : i32 to vector<1x512xi32>
    %45 = arith.cmpi sge, %43, %44 : vector<1x512xi32>
    %46 = arith.andi %41, %45 : vector<1x512xi1>
    %c0_i32_30 = arith.constant 0 : i32
    %47 = vector.broadcast %c0_i32_30 : i32 to vector<1x512xi32>
    %48 = arith.addi %13, %47 : vector<1x512xi32>
    %c16_i32_31 = arith.constant 16 : i32
    %49 = vector.broadcast %c16_i32_31 : i32 to vector<1x512xi32>
    %50 = arith.cmpi slt, %48, %49 : vector<1x512xi32>
    %51 = arith.andi %46, %50 : vector<1x512xi1>
    %c-1_i32_32 = arith.constant -1 : i32
    %52 = vector.broadcast %c-1_i32_32 : i32 to vector<1x512xi32>
    %53 = arith.addi %12, %52 : vector<1x512xi32>
    %c0_i32_33 = arith.constant 0 : i32
    %54 = vector.broadcast %c0_i32_33 : i32 to vector<1x512xi32>
    %55 = arith.cmpi sge, %53, %54 : vector<1x512xi32>
    %c-1_i32_34 = arith.constant -1 : i32
    %56 = vector.broadcast %c-1_i32_34 : i32 to vector<1x512xi32>
    %57 = arith.addi %12, %56 : vector<1x512xi32>
    %c16_i32_35 = arith.constant 16 : i32
    %58 = vector.broadcast %c16_i32_35 : i32 to vector<1x512xi32>
    %59 = arith.cmpi slt, %57, %58 : vector<1x512xi32>
    %60 = arith.andi %55, %59 : vector<1x512xi1>
    %c1_i32 = arith.constant 1 : i32
    %61 = vector.broadcast %c1_i32 : i32 to vector<1x512xi32>
    %62 = arith.addi %13, %61 : vector<1x512xi32>
    %c0_i32_36 = arith.constant 0 : i32
    %63 = vector.broadcast %c0_i32_36 : i32 to vector<1x512xi32>
    %64 = arith.cmpi sge, %62, %63 : vector<1x512xi32>
    %65 = arith.andi %60, %64 : vector<1x512xi1>
    %c1_i32_37 = arith.constant 1 : i32
    %66 = vector.broadcast %c1_i32_37 : i32 to vector<1x512xi32>
    %67 = arith.addi %13, %66 : vector<1x512xi32>
    %c16_i32_38 = arith.constant 16 : i32
    %68 = vector.broadcast %c16_i32_38 : i32 to vector<1x512xi32>
    %69 = arith.cmpi slt, %67, %68 : vector<1x512xi32>
    %70 = arith.andi %65, %69 : vector<1x512xi1>
    %c0_i32_39 = arith.constant 0 : i32
    %71 = vector.broadcast %c0_i32_39 : i32 to vector<1x512xi32>
    %72 = arith.addi %12, %71 : vector<1x512xi32>
    %c0_i32_40 = arith.constant 0 : i32
    %73 = vector.broadcast %c0_i32_40 : i32 to vector<1x512xi32>
    %74 = arith.cmpi sge, %72, %73 : vector<1x512xi32>
    %c0_i32_41 = arith.constant 0 : i32
    %75 = vector.broadcast %c0_i32_41 : i32 to vector<1x512xi32>
    %76 = arith.addi %12, %75 : vector<1x512xi32>
    %c16_i32_42 = arith.constant 16 : i32
    %77 = vector.broadcast %c16_i32_42 : i32 to vector<1x512xi32>
    %78 = arith.cmpi slt, %76, %77 : vector<1x512xi32>
    %79 = arith.andi %74, %78 : vector<1x512xi1>
    %c-1_i32_43 = arith.constant -1 : i32
    %80 = vector.broadcast %c-1_i32_43 : i32 to vector<1x512xi32>
    %81 = arith.addi %13, %80 : vector<1x512xi32>
    %c0_i32_44 = arith.constant 0 : i32
    %82 = vector.broadcast %c0_i32_44 : i32 to vector<1x512xi32>
    %83 = arith.cmpi sge, %81, %82 : vector<1x512xi32>
    %84 = arith.andi %79, %83 : vector<1x512xi1>
    %c-1_i32_45 = arith.constant -1 : i32
    %85 = vector.broadcast %c-1_i32_45 : i32 to vector<1x512xi32>
    %86 = arith.addi %13, %85 : vector<1x512xi32>
    %c16_i32_46 = arith.constant 16 : i32
    %87 = vector.broadcast %c16_i32_46 : i32 to vector<1x512xi32>
    %88 = arith.cmpi slt, %86, %87 : vector<1x512xi32>
    %89 = arith.andi %84, %88 : vector<1x512xi1>
    %c0_i32_47 = arith.constant 0 : i32
    %90 = vector.broadcast %c0_i32_47 : i32 to vector<1x512xi32>
    %91 = arith.addi %12, %90 : vector<1x512xi32>
    %c0_i32_48 = arith.constant 0 : i32
    %92 = vector.broadcast %c0_i32_48 : i32 to vector<1x512xi32>
    %93 = arith.cmpi sge, %91, %92 : vector<1x512xi32>
    %c0_i32_49 = arith.constant 0 : i32
    %94 = vector.broadcast %c0_i32_49 : i32 to vector<1x512xi32>
    %95 = arith.addi %12, %94 : vector<1x512xi32>
    %c16_i32_50 = arith.constant 16 : i32
    %96 = vector.broadcast %c16_i32_50 : i32 to vector<1x512xi32>
    %97 = arith.cmpi slt, %95, %96 : vector<1x512xi32>
    %98 = arith.andi %93, %97 : vector<1x512xi1>
    %c1_i32_51 = arith.constant 1 : i32
    %99 = vector.broadcast %c1_i32_51 : i32 to vector<1x512xi32>
    %100 = arith.addi %13, %99 : vector<1x512xi32>
    %c0_i32_52 = arith.constant 0 : i32
    %101 = vector.broadcast %c0_i32_52 : i32 to vector<1x512xi32>
    %102 = arith.cmpi sge, %100, %101 : vector<1x512xi32>
    %103 = arith.andi %98, %102 : vector<1x512xi1>
    %c1_i32_53 = arith.constant 1 : i32
    %104 = vector.broadcast %c1_i32_53 : i32 to vector<1x512xi32>
    %105 = arith.addi %13, %104 : vector<1x512xi32>
    %c16_i32_54 = arith.constant 16 : i32
    %106 = vector.broadcast %c16_i32_54 : i32 to vector<1x512xi32>
    %107 = arith.cmpi slt, %105, %106 : vector<1x512xi32>
    %108 = arith.andi %103, %107 : vector<1x512xi1>
    %c1_i32_55 = arith.constant 1 : i32
    %109 = vector.broadcast %c1_i32_55 : i32 to vector<1x512xi32>
    %110 = arith.addi %12, %109 : vector<1x512xi32>
    %c0_i32_56 = arith.constant 0 : i32
    %111 = vector.broadcast %c0_i32_56 : i32 to vector<1x512xi32>
    %112 = arith.cmpi sge, %110, %111 : vector<1x512xi32>
    %c1_i32_57 = arith.constant 1 : i32
    %113 = vector.broadcast %c1_i32_57 : i32 to vector<1x512xi32>
    %114 = arith.addi %12, %113 : vector<1x512xi32>
    %c16_i32_58 = arith.constant 16 : i32
    %115 = vector.broadcast %c16_i32_58 : i32 to vector<1x512xi32>
    %116 = arith.cmpi slt, %114, %115 : vector<1x512xi32>
    %117 = arith.andi %112, %116 : vector<1x512xi1>
    %c-1_i32_59 = arith.constant -1 : i32
    %118 = vector.broadcast %c-1_i32_59 : i32 to vector<1x512xi32>
    %119 = arith.addi %13, %118 : vector<1x512xi32>
    %c0_i32_60 = arith.constant 0 : i32
    %120 = vector.broadcast %c0_i32_60 : i32 to vector<1x512xi32>
    %121 = arith.cmpi sge, %119, %120 : vector<1x512xi32>
    %122 = arith.andi %117, %121 : vector<1x512xi1>
    %c-1_i32_61 = arith.constant -1 : i32
    %123 = vector.broadcast %c-1_i32_61 : i32 to vector<1x512xi32>
    %124 = arith.addi %13, %123 : vector<1x512xi32>
    %c16_i32_62 = arith.constant 16 : i32
    %125 = vector.broadcast %c16_i32_62 : i32 to vector<1x512xi32>
    %126 = arith.cmpi slt, %124, %125 : vector<1x512xi32>
    %127 = arith.andi %122, %126 : vector<1x512xi1>
    %c1_i32_63 = arith.constant 1 : i32
    %128 = vector.broadcast %c1_i32_63 : i32 to vector<1x512xi32>
    %129 = arith.addi %12, %128 : vector<1x512xi32>
    %c0_i32_64 = arith.constant 0 : i32
    %130 = vector.broadcast %c0_i32_64 : i32 to vector<1x512xi32>
    %131 = arith.cmpi sge, %129, %130 : vector<1x512xi32>
    %c1_i32_65 = arith.constant 1 : i32
    %132 = vector.broadcast %c1_i32_65 : i32 to vector<1x512xi32>
    %133 = arith.addi %12, %132 : vector<1x512xi32>
    %c16_i32_66 = arith.constant 16 : i32
    %134 = vector.broadcast %c16_i32_66 : i32 to vector<1x512xi32>
    %135 = arith.cmpi slt, %133, %134 : vector<1x512xi32>
    %136 = arith.andi %131, %135 : vector<1x512xi1>
    %c0_i32_67 = arith.constant 0 : i32
    %137 = vector.broadcast %c0_i32_67 : i32 to vector<1x512xi32>
    %138 = arith.addi %13, %137 : vector<1x512xi32>
    %c0_i32_68 = arith.constant 0 : i32
    %139 = vector.broadcast %c0_i32_68 : i32 to vector<1x512xi32>
    %140 = arith.cmpi sge, %138, %139 : vector<1x512xi32>
    %141 = arith.andi %136, %140 : vector<1x512xi1>
    %c0_i32_69 = arith.constant 0 : i32
    %142 = vector.broadcast %c0_i32_69 : i32 to vector<1x512xi32>
    %143 = arith.addi %13, %142 : vector<1x512xi32>
    %c16_i32_70 = arith.constant 16 : i32
    %144 = vector.broadcast %c16_i32_70 : i32 to vector<1x512xi32>
    %145 = arith.cmpi slt, %143, %144 : vector<1x512xi32>
    %146 = arith.andi %141, %145 : vector<1x512xi1>
    %c1_i32_71 = arith.constant 1 : i32
    %147 = vector.broadcast %c1_i32_71 : i32 to vector<1x512xi32>
    %148 = arith.addi %12, %147 : vector<1x512xi32>
    %c0_i32_72 = arith.constant 0 : i32
    %149 = vector.broadcast %c0_i32_72 : i32 to vector<1x512xi32>
    %150 = arith.cmpi sge, %148, %149 : vector<1x512xi32>
    %c1_i32_73 = arith.constant 1 : i32
    %151 = vector.broadcast %c1_i32_73 : i32 to vector<1x512xi32>
    %152 = arith.addi %12, %151 : vector<1x512xi32>
    %c16_i32_74 = arith.constant 16 : i32
    %153 = vector.broadcast %c16_i32_74 : i32 to vector<1x512xi32>
    %154 = arith.cmpi slt, %152, %153 : vector<1x512xi32>
    %155 = arith.andi %150, %154 : vector<1x512xi1>
    %c1_i32_75 = arith.constant 1 : i32
    %156 = vector.broadcast %c1_i32_75 : i32 to vector<1x512xi32>
    %157 = arith.addi %13, %156 : vector<1x512xi32>
    %c0_i32_76 = arith.constant 0 : i32
    %158 = vector.broadcast %c0_i32_76 : i32 to vector<1x512xi32>
    %159 = arith.cmpi sge, %157, %158 : vector<1x512xi32>
    %160 = arith.andi %155, %159 : vector<1x512xi1>
    %c1_i32_77 = arith.constant 1 : i32
    %161 = vector.broadcast %c1_i32_77 : i32 to vector<1x512xi32>
    %162 = arith.addi %13, %161 : vector<1x512xi32>
    %c16_i32_78 = arith.constant 16 : i32
    %163 = vector.broadcast %c16_i32_78 : i32 to vector<1x512xi32>
    %164 = arith.cmpi slt, %162, %163 : vector<1x512xi32>
    %165 = arith.andi %160, %164 : vector<1x512xi1>
    %c0_79 = arith.constant 0 : index
    %c111 = arith.constant 111 : index
    %166 = vector.load %arg10[%c0_79, %c111] : memref<8x768xf32, #tpu.memory_space<vmem>>, vector<8x512xf32>
    %cst = arith.constant 0.000000e+00 : f32
    %167 = vector.shape_cast %32 : vector<1x512xi1> to vector<1x512xi1>
    %168 = vector.broadcast %167 : vector<1x512xi1> to vector<8x512xi1>
    %169 = vector.broadcast %cst : f32 to vector<8x512xf32>
    %170 = arith.select %168, %166, %169 : vector<8x512xi1>, vector<8x512xf32>
    %c0_80 = arith.constant 0 : index
    %c0_81 = arith.constant 0 : index
    %171 = vector.load %arg12[%c0_80, %c0_81] : memref<72x512xf32, #tpu.memory_space<vmem>>, vector<8x512xf32>
    tpu.vector_store %arg12[%c0_80, %c0_81], %170 {strides = array<i32>} : memref<72x512xf32, #tpu.memory_space<vmem>>, vector<8x512xf32>,
    %c0_82 = arith.constant 0 : index
    %c112 = arith.constant 112 : index
    %172 = vector.load %arg10[%c0_82, %c112] : memref<8x768xf32, #tpu.memory_space<vmem>>, vector<8x512xf32>
    %cst_83 = arith.constant 0.000000e+00 : f32
    %173 = vector.shape_cast %51 : vector<1x512xi1> to vector<1x512xi1>
    %174 = vector.broadcast %173 : vector<1x512xi1> to vector<8x512xi1>
    %175 = vector.broadcast %cst_83 : f32 to vector<8x512xf32>
    %176 = arith.select %174, %172, %175 : vector<8x512xi1>, vector<8x512xf32>
    %c8 = arith.constant 8 : index
    %c0_84 = arith.constant 0 : index
    %177 = vector.load %arg12[%c8, %c0_84] : memref<72x512xf32, #tpu.memory_space<vmem>>, vector<8x512xf32>
    tpu.vector_store %arg12[%c8, %c0_84], %176 {strides = array<i32>} : memref<72x512xf32, #tpu.memory_space<vmem>>, vector<8x512xf32>,
    %c0_85 = arith.constant 0 : index
    %c113 = arith.constant 113 : index
    %178 = vector.load %arg10[%c0_85, %c113] : memref<8x768xf32, #tpu.memory_space<vmem>>, vector<8x512xf32>
    %cst_86 = arith.constant 0.000000e+00 : f32
    %179 = vector.shape_cast %70 : vector<1x512xi1> to vector<1x512xi1>
    %180 = vector.broadcast %179 : vector<1x512xi1> to vector<8x512xi1>
    %181 = vector.broadcast %cst_86 : f32 to vector<8x512xf32>
    %182 = arith.select %180, %178, %181 : vector<8x512xi1>, vector<8x512xf32>
    %c16 = arith.constant 16 : index
    %c0_87 = arith.constant 0 : index
    %183 = vector.load %arg12[%c16, %c0_87] : memref<72x512xf32, #tpu.memory_space<vmem>>, vector<8x512xf32>
    tpu.vector_store %arg12[%c16, %c0_87], %182 {strides = array<i32>} : memref<72x512xf32, #tpu.memory_space<vmem>>, vector<8x512xf32>,
    %c0_88 = arith.constant 0 : index
    %c127 = arith.constant 127 : index
    %184 = vector.load %arg10[%c0_88, %c127] : memref<8x768xf32, #tpu.memory_space<vmem>>, vector<8x512xf32>
    %cst_89 = arith.constant 0.000000e+00 : f32
    %185 = vector.shape_cast %89 : vector<1x512xi1> to vector<1x512xi1>
    %186 = vector.broadcast %185 : vector<1x512xi1> to vector<8x512xi1>
    %187 = vector.broadcast %cst_89 : f32 to vector<8x512xf32>
    %188 = arith.select %186, %184, %187 : vector<8x512xi1>, vector<8x512xf32>
    %c24 = arith.constant 24 : index
    %c0_90 = arith.constant 0 : index
    %189 = vector.load %arg12[%c24, %c0_90] : memref<72x512xf32, #tpu.memory_space<vmem>>, vector<8x512xf32>
    tpu.vector_store %arg12[%c24, %c0_90], %188 {strides = array<i32>} : memref<72x512xf32, #tpu.memory_space<vmem>>, vector<8x512xf32>,
    %c0_91 = arith.constant 0 : index
    %c128_92 = arith.constant 128 : index
    %190 = vector.load %arg10[%c0_91, %c128_92] : memref<8x768xf32, #tpu.memory_space<vmem>>, vector<8x512xf32>
    %c32 = arith.constant 32 : index
    %c0_93 = arith.constant 0 : index
    %191 = vector.load %arg12[%c32, %c0_93] : memref<72x512xf32, #tpu.memory_space<vmem>>, vector<8x512xf32>
    tpu.vector_store %arg12[%c32, %c0_93], %190 {strides = array<i32>} : memref<72x512xf32, #tpu.memory_space<vmem>>, vector<8x512xf32>,
    %c0_94 = arith.constant 0 : index
    %c129 = arith.constant 129 : index
    %192 = vector.load %arg10[%c0_94, %c129] : memref<8x768xf32, #tpu.memory_space<vmem>>, vector<8x512xf32>
    %cst_95 = arith.constant 0.000000e+00 : f32
    %193 = vector.shape_cast %108 : vector<1x512xi1> to vector<1x512xi1>
    %194 = vector.broadcast %193 : vector<1x512xi1> to vector<8x512xi1>
    %195 = vector.broadcast %cst_95 : f32 to vector<8x512xf32>
    %196 = arith.select %194, %192, %195 : vector<8x512xi1>, vector<8x512xf32>
    %c40 = arith.constant 40 : index
    %c0_96 = arith.constant 0 : index
    %197 = vector.load %arg12[%c40, %c0_96] : memref<72x512xf32, #tpu.memory_space<vmem>>, vector<8x512xf32>
    tpu.vector_store %arg12[%c40, %c0_96], %196 {strides = array<i32>} : memref<72x512xf32, #tpu.memory_space<vmem>>, vector<8x512xf32>,
    %c0_97 = arith.constant 0 : index
    %c143 = arith.constant 143 : index
    %198 = vector.load %arg10[%c0_97, %c143] : memref<8x768xf32, #tpu.memory_space<vmem>>, vector<8x512xf32>
    %cst_98 = arith.constant 0.000000e+00 : f32
    %199 = vector.shape_cast %127 : vector<1x512xi1> to vector<1x512xi1>
    %200 = vector.broadcast %199 : vector<1x512xi1> to vector<8x512xi1>
    %201 = vector.broadcast %cst_98 : f32 to vector<8x512xf32>
    %202 = arith.select %200, %198, %201 : vector<8x512xi1>, vector<8x512xf32>
    %c48 = arith.constant 48 : index
    %c0_99 = arith.constant 0 : index
    %203 = vector.load %arg12[%c48, %c0_99] : memref<72x512xf32, #tpu.memory_space<vmem>>, vector<8x512xf32>
    tpu.vector_store %arg12[%c48, %c0_99], %202 {strides = array<i32>} : memref<72x512xf32, #tpu.memory_space<vmem>>, vector<8x512xf32>,
    %c0_100 = arith.constant 0 : index
    %c144 = arith.constant 144 : index
    %204 = vector.load %arg10[%c0_100, %c144] : memref<8x768xf32, #tpu.memory_space<vmem>>, vector<8x512xf32>
    %cst_101 = arith.constant 0.000000e+00 : f32
    %205 = vector.shape_cast %146 : vector<1x512xi1> to vector<1x512xi1>
    %206 = vector.broadcast %205 : vector<1x512xi1> to vector<8x512xi1>
    %207 = vector.broadcast %cst_101 : f32 to vector<8x512xf32>
    %208 = arith.select %206, %204, %207 : vector<8x512xi1>, vector<8x512xf32>
    %c56 = arith.constant 56 : index
    %c0_102 = arith.constant 0 : index
    %209 = vector.load %arg12[%c56, %c0_102] : memref<72x512xf32, #tpu.memory_space<vmem>>, vector<8x512xf32>
    tpu.vector_store %arg12[%c56, %c0_102], %208 {strides = array<i32>} : memref<72x512xf32, #tpu.memory_space<vmem>>, vector<8x512xf32>,
    %c0_103 = arith.constant 0 : index
    %c145 = arith.constant 145 : index
    %210 = vector.load %arg10[%c0_103, %c145] : memref<8x768xf32, #tpu.memory_space<vmem>>, vector<8x512xf32>
    %cst_104 = arith.constant 0.000000e+00 : f32
    %211 = vector.shape_cast %165 : vector<1x512xi1> to vector<1x512xi1>
    %212 = vector.broadcast %211 : vector<1x512xi1> to vector<8x512xi1>
    %213 = vector.broadcast %cst_104 : f32 to vector<8x512xf32>
    %214 = arith.select %212, %210, %213 : vector<8x512xi1>, vector<8x512xf32>
    %c64 = arith.constant 64 : index
    %c0_105 = arith.constant 0 : index
    %215 = vector.load %arg12[%c64, %c0_105] : memref<72x512xf32, #tpu.memory_space<vmem>>, vector<8x512xf32>
    tpu.vector_store %arg12[%c64, %c0_105], %214 {strides = array<i32>} : memref<72x512xf32, #tpu.memory_space<vmem>>, vector<8x512xf32>,
    %c0_106 = arith.constant 0 : index
    %c0_107 = arith.constant 0 : index
    %216 = vector.load %arg12[%c0_106, %c0_107] : memref<72x512xf32, #tpu.memory_space<vmem>>, vector<72x512xf32>
    %c0_108 = arith.constant 0 : index
    %c0_109 = arith.constant 0 : index
    %217 = vector.load %arg3[%c0_108, %c0_109] : memref<8x72xf32, #tpu.memory_space<vmem>>, vector<8x72xf32>
    %cst_110 = arith.constant dense<0.000000e+00> : vector<8x512xf32>
    %218 = tpu.matmul %217, %216, %cst_110 {dimension_numbers = #tpu.dot_dimension_numbers<[1], [0], [0], [1], [0, 0, 1, 1], [], []>} : vector<8x72xf32>, vector<72x512xf32>, vector<8x512xf32> -> vector<8x512xf32>
    %c0_111 = arith.constant 0 : index
    %c0_112 = arith.constant 0 : index
    %219 = vector.load %arg4[%c0_111, %c0_112] : memref<8x1xf32, #tpu.memory_space<vmem>>, vector<8x1xf32>
    %220 = vector.broadcast %219 : vector<8x1xf32> to vector<8x512xf32>
    %221 = arith.addf %218, %220 : vector<8x512xf32>
    %cst_113 = arith.constant 0.000000e+00 : f32
    %222 = vector.broadcast %cst_113 : f32 to vector<8x512xf32>
    %223 = arith.maximumf %221, %222 : vector<8x512xf32>
    %cst_114 = arith.constant dense<0.000000e+00> : vector<8xf32>
    %224 = vector.multi_reduction <add>, %223, %cst_114 [1] : vector<8x512xf32> to vector<8xf32>
    %225 = vector.shape_cast %224 : vector<8xf32> to vector<8x1xf32>
    %cst_115 = arith.constant 5.120000e+02 : f32
    %226 = vector.broadcast %cst_115 : f32 to vector<8x1xf32>
    %227 = arith.divf %225, %226 : vector<8x1xf32>
    %228 = vector.broadcast %227 : vector<8x1xf32> to vector<8x512xf32>
    %229 = arith.subf %223, %228 : vector<8x512xf32>
    %230 = arith.mulf %229, %229 : vector<8x512xf32>
    %cst_116 = arith.constant dense<0.000000e+00> : vector<8xf32>
    %231 = vector.multi_reduction <add>, %230, %cst_116 [1] : vector<8x512xf32> to vector<8xf32>
    %232 = vector.shape_cast %231 : vector<8xf32> to vector<8x1xf32>
    %cst_117 = arith.constant 5.120000e+02 : f32
    %233 = vector.broadcast %cst_117 : f32 to vector<8x1xf32>
    %234 = arith.divf %232, %233 : vector<8x1xf32>
    %cst_118 = arith.constant 9.99999974E-6 : f32
    %235 = vector.broadcast %cst_118 : f32 to vector<8x1xf32>
    %236 = arith.addf %234, %235 : vector<8x1xf32>
    %237 = math.rsqrt %236 : vector<8x1xf32>
    %238 = vector.broadcast %237 : vector<8x1xf32> to vector<8x512xf32>
    %239 = arith.mulf %229, %238 : vector<8x512xf32>
    %c0_119 = arith.constant 0 : index
    %c0_120 = arith.constant 0 : index
    %240 = vector.load %arg5[%c0_119, %c0_120] : memref<8x1xf32, #tpu.memory_space<vmem>>, vector<8x1xf32>
    %241 = vector.broadcast %240 : vector<8x1xf32> to vector<8x512xf32>
    %242 = arith.mulf %239, %241 : vector<8x512xf32>
    %c0_121 = arith.constant 0 : index
    %c0_122 = arith.constant 0 : index
    %243 = vector.load %arg6[%c0_121, %c0_122] : memref<8x1xf32, #tpu.memory_space<vmem>>, vector<8x1xf32>
    %244 = vector.broadcast %243 : vector<8x1xf32> to vector<8x512xf32>
    %245 = arith.addf %242, %244 : vector<8x512xf32>
    %c0_123 = arith.constant 0 : index
    %c128_124 = arith.constant 128 : index
    %246 = vector.load %arg11[%c0_123, %c128_124] : memref<8x768xf32, #tpu.memory_space<vmem>>, vector<8x512xf32>
    tpu.vector_store %arg11[%c0_123, %c128_124], %245 {strides = array<i32>} : memref<8x768xf32, #tpu.memory_space<vmem>>, vector<8x512xf32>,
    %c0_125 = arith.constant 0 : index
    %c111_126 = arith.constant 111 : index
    %247 = vector.load %arg11[%c0_125, %c111_126] : memref<8x768xf32, #tpu.memory_space<vmem>>, vector<8x512xf32>
    %cst_127 = arith.constant 0.000000e+00 : f32
    %248 = vector.shape_cast %32 : vector<1x512xi1> to vector<1x512xi1>
    %249 = vector.broadcast %248 : vector<1x512xi1> to vector<8x512xi1>
    %250 = vector.broadcast %cst_127 : f32 to vector<8x512xf32>
    %251 = arith.select %249, %247, %250 : vector<8x512xi1>, vector<8x512xf32>
    %c0_128 = arith.constant 0 : index
    %c0_129 = arith.constant 0 : index
    %252 = vector.load %arg13[%c0_128, %c0_129] : memref<72x512xf32, #tpu.memory_space<vmem>>, vector<8x512xf32>
    tpu.vector_store %arg13[%c0_128, %c0_129], %251 {strides = array<i32>} : memref<72x512xf32, #tpu.memory_space<vmem>>, vector<8x512xf32>,
    %c0_130 = arith.constant 0 : index
    %c112_131 = arith.constant 112 : index
    %253 = vector.load %arg11[%c0_130, %c112_131] : memref<8x768xf32, #tpu.memory_space<vmem>>, vector<8x512xf32>
    %cst_132 = arith.constant 0.000000e+00 : f32
    %254 = vector.shape_cast %51 : vector<1x512xi1> to vector<1x512xi1>
    %255 = vector.broadcast %254 : vector<1x512xi1> to vector<8x512xi1>
    %256 = vector.broadcast %cst_132 : f32 to vector<8x512xf32>
    %257 = arith.select %255, %253, %256 : vector<8x512xi1>, vector<8x512xf32>
    %c8_133 = arith.constant 8 : index
    %c0_134 = arith.constant 0 : index
    %258 = vector.load %arg13[%c8_133, %c0_134] : memref<72x512xf32, #tpu.memory_space<vmem>>, vector<8x512xf32>
    tpu.vector_store %arg13[%c8_133, %c0_134], %257 {strides = array<i32>} : memref<72x512xf32, #tpu.memory_space<vmem>>, vector<8x512xf32>,
    %c0_135 = arith.constant 0 : index
    %c113_136 = arith.constant 113 : index
    %259 = vector.load %arg11[%c0_135, %c113_136] : memref<8x768xf32, #tpu.memory_space<vmem>>, vector<8x512xf32>
    %cst_137 = arith.constant 0.000000e+00 : f32
    %260 = vector.shape_cast %70 : vector<1x512xi1> to vector<1x512xi1>
    %261 = vector.broadcast %260 : vector<1x512xi1> to vector<8x512xi1>
    %262 = vector.broadcast %cst_137 : f32 to vector<8x512xf32>
    %263 = arith.select %261, %259, %262 : vector<8x512xi1>, vector<8x512xf32>
    %c16_138 = arith.constant 16 : index
    %c0_139 = arith.constant 0 : index
    %264 = vector.load %arg13[%c16_138, %c0_139] : memref<72x512xf32, #tpu.memory_space<vmem>>, vector<8x512xf32>
    tpu.vector_store %arg13[%c16_138, %c0_139], %263 {strides = array<i32>} : memref<72x512xf32, #tpu.memory_space<vmem>>, vector<8x512xf32>,
    %c0_140 = arith.constant 0 : index
    %c127_141 = arith.constant 127 : index
    %265 = vector.load %arg11[%c0_140, %c127_141] : memref<8x768xf32, #tpu.memory_space<vmem>>, vector<8x512xf32>
    %cst_142 = arith.constant 0.000000e+00 : f32
    %266 = vector.shape_cast %89 : vector<1x512xi1> to vector<1x512xi1>
    %267 = vector.broadcast %266 : vector<1x512xi1> to vector<8x512xi1>
    %268 = vector.broadcast %cst_142 : f32 to vector<8x512xf32>
    %269 = arith.select %267, %265, %268 : vector<8x512xi1>, vector<8x512xf32>
    %c24_143 = arith.constant 24 : index
    %c0_144 = arith.constant 0 : index
    %270 = vector.load %arg13[%c24_143, %c0_144] : memref<72x512xf32, #tpu.memory_space<vmem>>, vector<8x512xf32>
    tpu.vector_store %arg13[%c24_143, %c0_144], %269 {strides = array<i32>} : memref<72x512xf32, #tpu.memory_space<vmem>>, vector<8x512xf32>,
    %c0_145 = arith.constant 0 : index
    %c128_146 = arith.constant 128 : index
    %271 = vector.load %arg11[%c0_145, %c128_146] : memref<8x768xf32, #tpu.memory_space<vmem>>, vector<8x512xf32>
    %c32_147 = arith.constant 32 : index
    %c0_148 = arith.constant 0 : index
    %272 = vector.load %arg13[%c32_147, %c0_148] : memref<72x512xf32, #tpu.memory_space<vmem>>, vector<8x512xf32>
    tpu.vector_store %arg13[%c32_147, %c0_148], %271 {strides = array<i32>} : memref<72x512xf32, #tpu.memory_space<vmem>>, vector<8x512xf32>,
    %c0_149 = arith.constant 0 : index
    %c129_150 = arith.constant 129 : index
    %273 = vector.load %arg11[%c0_149, %c129_150] : memref<8x768xf32, #tpu.memory_space<vmem>>, vector<8x512xf32>
    %cst_151 = arith.constant 0.000000e+00 : f32
    %274 = vector.shape_cast %108 : vector<1x512xi1> to vector<1x512xi1>
    %275 = vector.broadcast %274 : vector<1x512xi1> to vector<8x512xi1>
    %276 = vector.broadcast %cst_151 : f32 to vector<8x512xf32>
    %277 = arith.select %275, %273, %276 : vector<8x512xi1>, vector<8x512xf32>
    %c40_152 = arith.constant 40 : index
    %c0_153 = arith.constant 0 : index
    %278 = vector.load %arg13[%c40_152, %c0_153] : memref<72x512xf32, #tpu.memory_space<vmem>>, vector<8x512xf32>
    tpu.vector_store %arg13[%c40_152, %c0_153], %277 {strides = array<i32>} : memref<72x512xf32, #tpu.memory_space<vmem>>, vector<8x512xf32>,
    %c0_154 = arith.constant 0 : index
    %c143_155 = arith.constant 143 : index
    %279 = vector.load %arg11[%c0_154, %c143_155] : memref<8x768xf32, #tpu.memory_space<vmem>>, vector<8x512xf32>
    %cst_156 = arith.constant 0.000000e+00 : f32
    %280 = vector.shape_cast %127 : vector<1x512xi1> to vector<1x512xi1>
    %281 = vector.broadcast %280 : vector<1x512xi1> to vector<8x512xi1>
    %282 = vector.broadcast %cst_156 : f32 to vector<8x512xf32>
    %283 = arith.select %281, %279, %282 : vector<8x512xi1>, vector<8x512xf32>
    %c48_157 = arith.constant 48 : index
    %c0_158 = arith.constant 0 : index
    %284 = vector.load %arg13[%c48_157, %c0_158] : memref<72x512xf32, #tpu.memory_space<vmem>>, vector<8x512xf32>
    tpu.vector_store %arg13[%c48_157, %c0_158], %283 {strides = array<i32>} : memref<72x512xf32, #tpu.memory_space<vmem>>, vector<8x512xf32>,
    %c0_159 = arith.constant 0 : index
    %c144_160 = arith.constant 144 : index
    %285 = vector.load %arg11[%c0_159, %c144_160] : memref<8x768xf32, #tpu.memory_space<vmem>>, vector<8x512xf32>
    %cst_161 = arith.constant 0.000000e+00 : f32
    %286 = vector.shape_cast %146 : vector<1x512xi1> to vector<1x512xi1>
    %287 = vector.broadcast %286 : vector<1x512xi1> to vector<8x512xi1>
    %288 = vector.broadcast %cst_161 : f32 to vector<8x512xf32>
    %289 = arith.select %287, %285, %288 : vector<8x512xi1>, vector<8x512xf32>
    %c56_162 = arith.constant 56 : index
    %c0_163 = arith.constant 0 : index
    %290 = vector.load %arg13[%c56_162, %c0_163] : memref<72x512xf32, #tpu.memory_space<vmem>>, vector<8x512xf32>
    tpu.vector_store %arg13[%c56_162, %c0_163], %289 {strides = array<i32>} : memref<72x512xf32, #tpu.memory_space<vmem>>, vector<8x512xf32>,
    %c0_164 = arith.constant 0 : index
    %c145_165 = arith.constant 145 : index
    %291 = vector.load %arg11[%c0_164, %c145_165] : memref<8x768xf32, #tpu.memory_space<vmem>>, vector<8x512xf32>
    %cst_166 = arith.constant 0.000000e+00 : f32
    %292 = vector.shape_cast %165 : vector<1x512xi1> to vector<1x512xi1>
    %293 = vector.broadcast %292 : vector<1x512xi1> to vector<8x512xi1>
    %294 = vector.broadcast %cst_166 : f32 to vector<8x512xf32>
    %295 = arith.select %293, %291, %294 : vector<8x512xi1>, vector<8x512xf32>
    %c64_167 = arith.constant 64 : index
    %c0_168 = arith.constant 0 : index
    %296 = vector.load %arg13[%c64_167, %c0_168] : memref<72x512xf32, #tpu.memory_space<vmem>>, vector<8x512xf32>
    tpu.vector_store %arg13[%c64_167, %c0_168], %295 {strides = array<i32>} : memref<72x512xf32, #tpu.memory_space<vmem>>, vector<8x512xf32>,
    %c0_169 = arith.constant 0 : index
    %c0_170 = arith.constant 0 : index
    %297 = vector.load %arg13[%c0_169, %c0_170] : memref<72x512xf32, #tpu.memory_space<vmem>>, vector<72x512xf32>
    %c0_171 = arith.constant 0 : index
    %c0_172 = arith.constant 0 : index
    %298 = vector.load %arg7[%c0_171, %c0_172] : memref<8x72xf32, #tpu.memory_space<vmem>>, vector<8x72xf32>
    %cst_173 = arith.constant dense<0.000000e+00> : vector<8x512xf32>
    %299 = tpu.matmul %298, %297, %cst_173 {dimension_numbers = #tpu.dot_dimension_numbers<[1], [0], [0], [1], [0, 0, 1, 1], [], []>} : vector<8x72xf32>, vector<72x512xf32>, vector<8x512xf32> -> vector<8x512xf32>
    %c0_174 = arith.constant 0 : index
    %c0_175 = arith.constant 0 : index
    %300 = vector.load %arg8[%c0_174, %c0_175] : memref<8x1xf32, #tpu.memory_space<vmem>>, vector<8x1xf32>
    %301 = vector.broadcast %300 : vector<8x1xf32> to vector<8x512xf32>
    %302 = arith.addf %299, %301 : vector<8x512xf32>
    %cst_176 = arith.constant 0.000000e+00 : f32
    %303 = vector.broadcast %cst_176 : f32 to vector<8x512xf32>
    %304 = arith.maximumf %302, %303 : vector<8x512xf32>
    %305 = vector.extract_strided_slice %304 {offsets = [0, 0], sizes = [8, 256], strides = [1, 1]} : vector<8x512xf32> to vector<8x256xf32>
    %c0_177 = arith.constant 0 : index
    %c0_178 = arith.constant 0 : index
    %c0_179 = arith.constant 0 : index
    %306 = vector.load %arg9[%c0_177, %c0_178, %c0_179] : memref<2x8x256xf32, #tpu.memory_space<vmem>>, vector<1x8x256xf32>
    %307 = vector.shape_cast %306 : vector<1x8x256xf32> to vector<8x256xf32>
    %308 = vector.shape_cast %305 : vector<8x256xf32> to vector<1x8x256xf32>
    tpu.vector_store %arg9[%c0_177, %c0_178, %c0_179], %308 {strides = array<i32>} : memref<2x8x256xf32, #tpu.memory_space<vmem>>, vector<1x8x256xf32>,
    %309 = vector.extract_strided_slice %304 {offsets = [0, 256], sizes = [8, 256], strides = [1, 1]} : vector<8x512xf32> to vector<8x256xf32>
    %c1_180 = arith.constant 1 : index
    %c0_181 = arith.constant 0 : index
    %c0_182 = arith.constant 0 : index
    %310 = vector.load %arg9[%c1_180, %c0_181, %c0_182] : memref<2x8x256xf32, #tpu.memory_space<vmem>>, vector<1x8x256xf32>
    %311 = vector.shape_cast %310 : vector<1x8x256xf32> to vector<8x256xf32>
    %312 = vector.shape_cast %309 : vector<8x256xf32> to vector<1x8x256xf32>
    tpu.vector_store %arg9[%c1_180, %c0_181, %c0_182], %312 {strides = array<i32>} : memref<2x8x256xf32, #tpu.memory_space<vmem>>, vector<1x8x256xf32>,
    return
  }
}

</mosaic_0001>

<bundles_post_ra>
// kernel: tpu_custom_call.1
= control target key start
LH: loop header
LB: loop body
LE: loop exit
PB: predicated region body
PF: predicated region fallthrough
CT: control target
= control target key end

     0   :  { %14 = vsyncpa [#allocation7], 0  ;;  %s2246_s0 = inlined_call_operand.vmem [shape: f32[2,4,256], index: 0, kind: input, shape index: {}]   ;;  %s2247_s1 = inlined_call_operand.vmem [shape: f32[2,4,256], index: 1, kind: input, shape index: {}]   ;;  %s2248_s2 = inlined_call_operand.hbm [shape: s32[2,512], index: 2, kind: input, shape index: {}]   ;;  %s2249_s3 = inlined_call_operand.vmem [shape: f32[8,72], index: 3, kind: input, shape index: {}]   ;;  %s2250_s4 = inlined_call_operand.vmem [shape: f32[8,1], index: 4, kind: input, shape index: {}]   ;;  %s2251_s5 = inlined_call_operand.vmem [shape: f32[8,1], index: 5, kind: input, shape index: {}]   ;;  %s2252_s6 = inlined_call_operand.vmem [shape: f32[8,1], index: 6, kind: input, shape index: {}]   ;;  %s2253_s7 = inlined_call_operand.vmem [shape: f32[8,72], index: 7, kind: input, shape index: {}]   ;;  %s2254_s8 = inlined_call_operand.vmem [shape: f32[8,1], index: 8, kind: input, shape index: {}]   ;;  %s2255_s9 = inlined_call_operand.hbm [shape: f32[2,8,256], index: 9, kind: output, shape index: {}]  }
   0x1   :  { %15 = vsyncpa [#allocation8], 0  ;;  %s1470_s30 = smov [#allocation6]  }
   0x2   :  { %s26_s10 = sshll.u32 %s1470_s30, 4  ;;  %s27_s10 = int_to_ptr.vmem [resolvable:$true] %s26_s10 }
   0x3   :  { %s1434_s11 = scalar_lea.vmem %s27_s10, 128  ;;  %p1439_p1 = scmp.lt.s32.totalorder %s27_s10, %s27_s10 }
   0x4   :  { %p1435_p0 = scmp.ne.s32.totalorder %s27_s10, %s1434_s11  ;;  %p1440_p2 = scmp.lt.s32.totalorder %s1434_s11, %s1434_s11 }
   0x6   :  { %p1441_p3 = por %p1440_p2, %p1439_p1 }
   0x8   :  { %p1442_p4 = pnand %p1441_p3, %p1435_p0 }
   0xa   :  { %1445 = shalt.err (!%p1442_p4)
}
   0xb   :  { %29 = dma.hbm_to_vmem [thread:$0]  %s2248_s2, 128, %s27_s10, [#allocation7]  }
   0xc   :  { %1466 = dma.done.wait [#allocation7], 128  }
   0xd   :  { %1467 = vsyncadd [#allocation7], 4294967168  ;;  %v1471_v0 = vmov 0   ;;  %v527_v1 = vld [vmem:[#allocation2] sm:$0xff]  ;;  %s1472_s18 = smov 111   ;;  %v1335_v6 = vld [vmem:[%s2246_s0 + $0x8] sm:$0xff]  ;;  %v115_v22 = vlaneseq }
   0xe   :  { %1418 = vset.pattern.permute.xlu0 %v1471_v0  ;;  %1419 = vset.pattern.permute.xlu1 %v1471_v0  ;;  %v45_v2 = vld [vmem:[%s2246_s0] sm:$0xff]  ;;  %v1336_v7 = vld [vmem:[%s2247_s1 + $0x8] sm:$0xff]  ;;  %62 = vst [vmem:[#allocation2 + $0x10] sm:$0xf] %v1335_v6  ;;  %v60_v9 = vcombine.high %v1335_v6, %v1335_v6  ;;  %s1473_s0 = smov 112   ;;  %s1475_s22 = smov 127  }
   0xf   :  { %v51_v3 = vld [vmem:[%s2247_s1] sm:$0xff]  ;;  %562 = vrot.lane.b32.xlu1 %v527_v1, %s1472_s18  ;;  %49 = vst [vmem:[#allocation2 + $0x28] sm:$0xf] %v45_v2  ;;  %v47_v5 = vcombine.high %v45_v2, %v45_v2  ;;  %v67_v8 = vcombine.low %v1336_v7, %v1336_v7  ;;  %70 = vst [vmem:[#allocation2 + $0x8] sm:$0xf0] %v1336_v7  ;;  %s1474_s1 = smov 113  }
  0x10   :  { %v53_v4 = vcombine.low %v51_v3, %v51_v3  ;;  %56 = vst [vmem:[#allocation2 + $0x18] sm:$0xf0] %v51_v3  ;;  %63 = vst [vmem:[#allocation2 + $0x8] sm:$0xf] %v60_v9  ;;  %s1476_s23 = smov 1   ;;  %s1477_s24 = smov 15  }
  0x11   :  { %50 = vst [vmem:[#allocation2 + $0x18] sm:$0xf] %v47_v5  ;;  %69 = vst [vmem:[#allocation2 + $0x10] sm:$0xf0] %v67_v8  ;;  %v283_v14 = vld [vmem:[#allocation2 + $0x20] sm:$0xff]  ;;  %s1478_s25 = smov 16  }
  0x12   :  { %55 = vst [vmem:[#allocation2 + $0x28] sm:$0xf0] %v53_v4  ;;  %s1479_s26 = smov 17   ;;  %v1480_v15 = vmov 0.0   ;;  %v618_v16 = vld [vmem:[%s2250_s4] sm:$0xff]  ;;  %v116_v23 = vshrl.u32 %v115_v22, 7 }
  0x13   :  { %692 = vmatprep.mubr.f32.mxu0 %v1480_v15  ;;  %763 = vmatprep.mubr.f32.mxu1 %v1480_v15  ;;  %v1635_v17 = vld [vmem:[#allocation6] ss:$2 sm:$0xf]  ;;  %v1637_v18 = vld [vmem:[#allocation6 + $0x1] ss:$2 sm:$0xf] }
  0x14   :  { %v99_v19 = vadd.s32 1, %v1635_v17  ;;  %v1641_v20 = vadd.s32 1, %v1637_v18  ;;  %vm2257_vm6 = vcmp.ge.s32.totalorder %v1637_v18, 0  ;;  %v1655_v24 = vadd.s32 4294967295, %v1637_v18 }
  0x15   :  { %vm2256_vm8 = vcmp.lt.s32.totalorder %v1637_v18, 16  ;;  %v1664_v26 = vsub.s32 1, %v116_v23  ;;  %v1666_v27 = vsub.s32 0, %v116_v23  ;;  %v1713_v45 = vsub.s32 3, %v116_v23 }
  0x16   :  { %vm100_vm0 = vcmp.ge.s32.totalorder %v99_v19, 0  ;;  %vm101_vm1 = vcmp.lt.s32.totalorder %v99_v19, 16  ;;  %vm2258_vm2 = vcmp.ge.s32.totalorder %v1641_v20, 0  ;;  %vm2260_vm4 = vcmp.lt.s32.totalorder %v1641_v20, 16 }
  0x17   :  { %v1573_v13 = vld [vmem:[#allocation2 + $0x8] sm:$0xff]  ;;  %vm1644_vm3 = vmand %vm100_vm0, %vm101_vm1  ;;  %vm2262_vm10 = vcmp.ge.s32.totalorder %v1655_v24, 0  ;;  %vm2264_vm12 = vcmp.lt.s32.totalorder %v1655_v24, 16  ;;  %vm2259_vm0 = vcmask 908288   ;;  %v2301_v49 = vmov 0 }
  0x18   :  { %v1553_v11 = vld [vmem:[#allocation2 + $0x18] sm:$0xff]  ;;  %v1559_v12 = vld [vmem:[#allocation2 + $0x10] sm:$0xff]  ;;  %vm107_vm5 = vmand %vm1644_vm3, %vm2258_vm2  ;;  %v1723_v50 = vsub.s32 2, %v116_v23  ;;  %v2303_v53 = vmov 0  ;;  %v2309_v4 = vmov 0  ;;  %v2313_v23 = vmov 0 }
  0x19   :  { %v1551_v10 = vld [vmem:[#allocation2 + $0x28] sm:$0xff]  ;;  %556 = vrot.lane.b32.xlu0 %v1553_v11, %s1472_s18  ;;  %vm108_vm7 = vmand %vm107_vm5, %vm2260_vm4  ;;  %vm93_vm5 = vcmp.lt.s32.totalorder %v1635_v17, 16 }
  0x1a   :  { %554 = vrot.lane.b32.xlu1 %v1551_v10, %s1472_s18  ;;  %vm105_vm9 = vmand %vm1644_vm3, %vm2257_vm6  ;;  %v528_v28 = vsel %vm108_vm7, 1, %v1471_v0  ;;  %vm2263_vm7 = vcmask 916480  }
  0x1b   :  { %vm106_vm11 = vmand %vm105_vm9, %vm2256_vm8  ;;  %v536_v29 = vrot.slane %v528_v28, %v1664_v26  ;;  %v532_v30 = vrot.slane %v528_v28, %v1666_v27  ;;  %v544_v54 = vrot.slane %v528_v28, %v1713_v45  ;;  %v540_v57 = vrot.slane %v528_v28, %v1723_v50 }
  0x1c   :  { %vm103_vm13 = vmand %vm1644_vm3, %vm2262_vm10  ;;  %v1680_v33 = vsel %vm106_vm11, 1, %v1471_v0  ;;  %vm92_vm3 = vcmp.ge.s32.totalorder %v1635_v17, 0 }
  0x1d   :  { %558 = vrot.lane.b32.xlu0 %v1559_v12, %s1472_s18  ;;  %vm104_vm14 = vmand %vm103_vm13, %vm2264_vm12  ;;  %vm1684_vm15 = vcmp.eq.s32.totalorder %v536_v29, 1  ;;  %vm1688_vm1 = vcmp.eq.s32.totalorder %v532_v30, 1  ;;  %v478_v36 = vrot.slane %v1680_v33, %v1664_v26  ;;  %v474_v39 = vrot.slane %v1680_v33, %v1666_v27 }
  0x1e   :  { %498 = vrot.lane.b32.xlu1 %v1553_v11, %s1473_s0  ;;  %v1697_v40 = vsel %vm104_vm14, 1, %v1471_v0  ;;  %vm1715_vm11 = vmand %vm92_vm3, %vm93_vm5  ;;  %vm2261_vm14 = vcmask 924672   ;;  %vm1746_vm6 = vcmp.eq.s32.totalorder %v544_v54, 1  ;;  %v482_v19 = vrot.slane %v1680_v33, %v1723_v50 }
  0x1f   :  { %vm1707_vm9 = vcmp.eq.s32.totalorder %v478_v36, 1  ;;  %v420_v44 = vrot.slane %v1697_v40, %v1664_v26  ;;  %vm1719_vm13 = vcmp.eq.s32.totalorder %v474_v39, 1  ;;  %vm97_vm3 = vmand %vm1715_vm11, %vm2258_vm2  ;;  %v416_v60 = vrot.slane %v1697_v40, %v1666_v27 }
  0x20   :  { %v2302_v49 = vsel %vm1719_vm13, 4294967295, %v2301_v49  ;;  %vm98_vm8 = vmand %vm97_vm3, %vm2260_vm4  ;;  %vm1752_vm2 = vcmp.eq.s32.totalorder %v540_v57, 1  ;;  %v424_v36 = vrot.slane %v1697_v40, %v1723_v50 }
  0x21   :  { %500 = vrot.lane.b32.xlu0 %v1559_v12, %s1473_s0  ;;  %vm1735_vm5 = vcmp.eq.s32.totalorder %v420_v44, 1  ;;  %vm1765_vm3 = vcmp.eq.s32.totalorder %v416_v60, 1  ;;  %v2325_v44 = vmov 0 }
  0x22   :  { %496 = vrot.lane.b32.xlu1 %v1551_v10, %s1473_s0  ;;  %v2304_v53 = vsel %vm1735_vm5, 4294967295, %v2303_v53  ;;  %v2310_v4 = vsel %vm1765_vm3, 4294967295, %v2309_v4 }
  0x25   :  { %440 = vrot.lane.b32.xlu0 %v1553_v11, %s1474_s1 }
  0x26   :  { %442 = vrot.lane.b32.xlu1 %v1559_v12, %s1474_s1 }
  0x29   :  { %560 = vrot.lane.b32.xlu0 %v1573_v13, %s1472_s18 }
  0x2a   :  { %382 = vrot.lane.b32.xlu1 %v1553_v11, %s1475_s22 }
  0x2d   :  { %438 = vrot.lane.b32.xlu0 %v1551_v10, %s1474_s1 }
  0x2e   :  { %502 = vrot.lane.b32.xlu1 %v1573_v13, %s1473_s0 }
  0x31   :  { %384 = vrot.lane.b32.xlu0 %v1559_v12, %s1475_s22 }
  0x32   :  { %380 = vrot.lane.b32.xlu1 %v1551_v10, %s1475_s22 }
  0x35   :  { %504 = vrot.lane.b32.xlu0 %v527_v1, %s1473_s0 }
  0x36   :  { %446 = vrot.lane.b32.xlu1 %v527_v1, %s1474_s1 }
  0x39   :  { %444 = vrot.lane.b32.xlu0 %v1573_v13, %s1474_s1 }
  0x3a   :  { %318 = vrot.lane.b32.xlu1 %v1553_v11, %s1476_s23 }
  0x3d   :  { %316 = vrot.lane.b32.xlu0 %v1551_v10, %s1476_s23 }
  0x3e   :  { %388 = vrot.lane.b32.xlu1 %v527_v1, %s1475_s22  ;;  %v1757_v1 = vsel %vm98_vm8, 1, %v1471_v0  ;;  %vm2265_vm8 = vcmask 1039360  }
  0x3f   :  { %v362_v5 = vrot.slane %v1757_v1, %v1664_v26  ;;  %v358_v8 = vrot.slane %v1757_v1, %v1666_v27 }
  0x41   :  { %386 = vrot.lane.b32.xlu0 %v1573_v13, %s1475_s22  ;;  %vm1780_vm4 = vcmp.eq.s32.totalorder %v362_v5, 1 }
  0x42   :  { %258 = vrot.lane.b32.xlu1 %v1551_v10, %s1477_s24 }
  0x45   :  { %314 = vrot.lane.b32.xlu0 %v283_v14, %s1476_s23 }
  0x46   :  { %256 = vrot.lane.b32.xlu1 %v283_v14, %s1477_s24 }
  0x49   :  { %260 = vrot.lane.b32.xlu0 %v1553_v11, %s1477_s24 }
  0x4a   :  { %202 = vrot.lane.b32.xlu1 %v1553_v11, %s1478_s25 }
  0x4d   :  { %200 = vrot.lane.b32.xlu0 %v1551_v10, %s1478_s25 }
  0x4e   :  { %322 = vrot.lane.b32.xlu1 %v1573_v13, %s1476_s23 }
  0x51   :  { %320 = vrot.lane.b32.xlu0 %v1559_v12, %s1476_s23 }
  0x52   :  { %142 = vrot.lane.b32.xlu1 %v1551_v10, %s1479_s26 }
  0x55   :  { %198 = vrot.lane.b32.xlu0 %v283_v14, %s1478_s25 }
  0x56   :  { %262 = vrot.lane.b32.xlu1 %v1559_v12, %s1477_s24 }
  0x59   :  { %144 = vrot.lane.b32.xlu0 %v1553_v11, %s1479_s26 }
  0x5a   :  { %140 = vrot.lane.b32.xlu1 %v283_v14, %s1479_s26  ;;  %v2311_v14 = vmov 0 }
  0x5b   :  { %v2312_v14 = vsel %vm1780_vm4, 4294967295, %v2311_v14 }
  0x5d   :  { %264 = vrot.lane.b32.xlu0 %v1573_v13, %s1477_s24 }
  0x5e   :  { %206 = vrot.lane.b32.xlu1 %v1573_v13, %s1478_s25 }
  0x61   :  { %204 = vrot.lane.b32.xlu0 %v1559_v12, %s1478_s25 }
  0x62   :  { %148 = vrot.lane.b32.xlu1 %v1573_v13, %s1479_s26 }
  0x65   :  { %146 = vrot.lane.b32.xlu0 %v1559_v12, %s1479_s26 }
  0x69   :  { %621 = vperm.xlu0 %1418, %v618_v16   ;;  %v486_v16 = vrot.slane %v1680_v33, %v1713_v45 }
  0x81   :  { %v563_v25 = vpop.permute.xlu1 %562 }
  0x8b   :  { %v557_v32 = vpop.permute.xlu0 %556 }
  0x8c   :  { %v555_v31 = vpop.permute.xlu1 %554 }
  0x8d   :  { %v565_v42 = vsel %vm2259_vm0, %v555_v31, %v557_v32  ;;  %v2317_v31 = vmov 0 }
  0x8f   :  { %v559_v37 = vpop.permute.xlu0 %558 }
  0x90   :  { %v499_v38 = vpop.permute.xlu1 %498  ;;  %v566_v41 = vsel %vm2259_vm0, %v557_v32, %v559_v37 }
  0x91   :  { %1341 = vmatprep.subr.msk.mxu0 %vm1684_vm15, %v566_v41 }
  0x92   :  { %1342 = vmatpush1.msk.msra.mxu0 %vm1688_vm1, %v565_v42 }
  0x93   :  { %v501_v47 = vpop.permute.xlu0 %500 }
  0x94   :  { %v497_v48 = vpop.permute.xlu1 %496  ;;  %v508_v51 = vsel %vm2263_vm7, %v499_v38, %v501_v47 }
  0x95   :  { %v507_v52 = vsel %vm2263_vm7, %v497_v48, %v499_v38  ;;  %1343 = vmatprep.subr.msk.mxu0 %vm1707_vm9, %v508_v51  ;;  %vm1805_vm7 = vcmp.eq.s32.totalorder %v482_v19, 1  ;;  %v2330_v48 = vmov 0  ;;  %v370_v51 = vrot.slane %v1757_v1, %v1713_v45 }
  0x96   :  { %1344 = vmatpush1.msk.msra.mxu0 %vm1719_vm13, %v507_v52  ;;  %v2318_v31 = vsel %vm1805_vm7, 4294967295, %v2317_v31 }
  0x97   :  { %v441_v56 = vpop.permute.xlu0 %440 }
  0x98   :  { %v443_v55 = vpop.permute.xlu1 %442 }
  0x99   :  { %v450_v58 = vsel %vm2261_vm14, %v441_v56, %v443_v55 }
  0x9a   :  { %1345 = vmatprep.subr.msk.mxu0 %vm1735_vm5, %v450_v58  ;;  %vm2273_vm5 = vcmask 7168  }
  0x9b   :  { %v561_v61 = vpop.permute.xlu0 %560 }
  0x9c   :  { %v383_v62 = vpop.permute.xlu1 %382  ;;  %v568_v2 = vsel %vm2259_vm0, %v561_v61, %v563_v25  ;;  %v567_v3 = vsel %vm2259_vm0, %v559_v37, %v561_v61  ;;  %vm95_vm0 = vmand %vm1715_vm11, %vm2262_vm10  ;;  %v74_v25 = vadd.s32 4294967295, %v1635_v17  ;;  %vm1801_vm10 = vcmp.eq.s32.totalorder %v486_v16, 1 }
  0x9d   :  { %1357 = vmatprep.subr.msk.mxu1 %vm1746_vm6, %v568_v2  ;;  %vm96_vm11 = vmand %vm95_vm0, %vm2264_vm12  ;;  %v428_v17 = vrot.slane %v1697_v40, %v1713_v45  ;;  %v2321_v40 = vmov 0  ;;  %v2344_v16 = vmov 0 }
  0x9e   :  { %1358 = vmatpush1.msk.msra.mxu1 %vm1752_vm2, %v567_v3  ;;  %v1815_v37 = vsel %vm96_vm11, 1, %v1471_v0  ;;  %vm75_vm0 = vcmp.ge.s32.totalorder %v74_v25, 0  ;;  %vm76_vm12 = vcmp.lt.s32.totalorder %v74_v25, 16  ;;  %v2341_v3 = vmov 0 }
  0x9f   :  { %v439_v6 = vpop.permute.xlu0 %438  ;;  %vm1830_vm11 = vmand %vm75_vm0, %vm76_vm12  ;;  %vm2329_vm12 = vcmp.ge.s32.totalorder %v1641_v20, 0  ;;  %v292_v58 = vrot.slane %v1815_v37, %v1666_v27 }
  0xa0   :  { %v503_v7 = vpop.permute.xlu1 %502  ;;  %v449_v9 = vsel %vm2261_vm14, %v439_v6, %v441_v56  ;;  %vm1788_vm14 = vcmp.eq.s32.totalorder %v358_v8, 1  ;;  %vm89_vm0 = vmand %vm1830_vm11, %vm2329_vm12  ;;  %vm2333_vm12 = vcmp.ge.s32.totalorder %v1637_v18, 0 }
  0xa1   :  { %1346 = vmatpush1.msk.msra.mxu0 %vm1765_vm3, %v449_v9  ;;  %v2314_v23 = vsel %vm1788_vm14, 4294967295, %v2313_v23 }
  0xa3   :  { %v385_v21 = vpop.permute.xlu0 %384 }
  0xa4   :  { %v381_v22 = vpop.permute.xlu1 %380  ;;  %v392_v28 = vsel %vm2265_vm8, %v383_v62, %v385_v21 }
  0xa5   :  { %v391_v29 = vsel %vm2265_vm8, %v381_v22, %v383_v62  ;;  %1347 = vmatprep.subr.msk.mxu0 %vm1780_vm4, %v392_v28  ;;  %vm2319_vm8 = vcmask 916480   ;;  %vm1824_vm4 = vcmp.eq.s32.totalorder %v428_v17, 1  ;;  %v2349_v28 = vmov 0 }
  0xa6   :  { %1348 = vmatpush1.msk.msra.mxu0 %vm1788_vm14, %v391_v29  ;;  %vm2320_vm14 = vmmov %vm2319_vm8  ;;  %v2322_v40 = vsel %vm1824_vm4, 4294967295, %v2321_v40  ;;  %v304_v29 = vrot.slane %v1815_v37, %v1713_v45 }
  0xa7   :  { %v505_v32 = vpop.permute.xlu0 %504  ;;  %650 = vmatprep.subr.mxu0 %v1553_v11  ;;  %v509_v39 = vsel %vm2320_vm14, %v501_v47, %v503_v7  ;;  %v296_v11 = vrot.slane %v1815_v37, %v1664_v26  ;;  %vm1836_vm14 = vcmp.eq.s32.totalorder %v424_v36, 1 }
  0xa8   :  { %v447_v33 = vpop.permute.xlu1 %446  ;;  %v510_v38 = vsel %vm2319_vm8, %v503_v7, %v505_v32  ;;  %651 = vmatpush1.msra.mxu0 %v1551_v10  ;;  %v2326_v44 = vsel %vm1836_vm14, 4294967295, %v2325_v44  ;;  %vm2327_vm8 = vcmask 924672  }
  0xa9   :  { %1359 = vmatprep.subr.msk.mxu1 %vm1801_vm10, %v510_v38  ;;  %vm2328_vm3 = vmmov %vm2327_vm8  ;;  %vm1850_vm13 = vcmp.eq.s32.totalorder %v296_v11, 1 }
  0xaa   :  { %1360 = vmatpush1.msk.msra.mxu1 %vm1805_vm7, %v509_v39  ;;  %v2331_v48 = vsel %vm1850_vm13, 4294967295, %v2330_v48  ;;  %vm1889_vm7 = vcmp.eq.s32.totalorder %v292_v58, 1 }
  0xab   :  { %v445_v10 = vpop.permute.xlu0 %444  ;;  %v2342_v3 = vsel %vm1889_vm7, 4294967295, %v2341_v3 }
  0xac   :  { %v1834_v42 = vpop.permute.xlu1 %318  ;;  %v451_v46 = vsel %vm2327_vm8, %v443_v55, %v445_v10  ;;  %v452_v47 = vsel %vm2328_vm3, %v445_v10, %v447_v33  ;;  %v366_v55 = vrot.slane %v1757_v1, %v1723_v50  ;;  %vm2332_vm3 = vcmp.lt.s32.totalorder %v1641_v20, 16 }
  0xad   :  { %1361 = vmatprep.subr.msk.mxu1 %vm1824_vm4, %v452_v47  ;;  %vm91_vm8 = vmand %vm89_vm0, %vm2332_vm3  ;;  %vm1868_vm4 = vcmp.eq.s32.totalorder %v370_v51, 1  ;;  %vm2338_vm0 = vcmask 1039360   ;;  %v300_v33 = vrot.slane %v1815_v37, %v1723_v50  ;;  %v2354_v37 = vmov 0 }
  0xae   :  { %1362 = vmatpush1.msk.msra.mxu1 %vm1836_vm14, %v451_v46  ;;  %vm84_vm14 = vmand %vm1830_vm11, %vm2333_vm12  ;;  %v1879_v62 = vsel %vm91_vm8, 1, %v1471_v0  ;;  %vm2340_vm12 = vcmp.lt.s32.totalorder %v1637_v18, 16  ;;  %vm2277_vm8 = vcmask 121856   ;;  %v2358_v47 = vmov 0 }
  0xaf   :  { %v317_v52 = vpop.permute.xlu0 %316  ;;  %vm2339_vm3 = vmmov %vm2338_vm0  ;;  %v238_v5 = vrot.slane %v1879_v62, %v1664_v26  ;;  %v234_v8 = vrot.slane %v1879_v62, %v1666_v27 }
  0xb0   :  { %v389_v54 = vpop.permute.xlu1 %388  ;;  %v326_v56 = vsel %vm2273_vm5, %v317_v52, %v1834_v42  ;;  %vm1874_vm5 = vcmp.eq.s32.totalorder %v366_v55, 1  ;;  %v2361_v55 = vmov 0 }
  0xb1   :  { %1349 = vmatprep.subr.msk.mxu0 %vm1850_vm13, %v326_v56  ;;  %vm86_vm13 = vmand %vm84_vm14, %vm2340_vm12  ;;  %vm2343_vm14 = vcmask 7168   ;;  %vm2348_vm12 = vcmp.ge.s32.totalorder %v1655_v24, 0  ;;  %v246_v56 = vrot.slane %v1879_v62, %v1713_v45 }
  0xb2   :  { %v1898_v18 = vsel %vm86_vm13, 1, %v1471_v0  ;;  %vm1913_vm13 = vcmp.eq.s32.totalorder %v234_v8, 1 }
  0xb3   :  { %v387_v60 = vpop.permute.xlu0 %386  ;;  %v180_v19 = vrot.slane %v1898_v18, %v1664_v26  ;;  %v176_v39 = vrot.slane %v1898_v18, %v1666_v27 }
  0xb4   :  { %v259_v61 = vpop.permute.xlu1 %258  ;;  %v393_v1 = vsel %vm2338_vm0, %v385_v21, %v387_v60  ;;  %v394_v2 = vsel %vm2339_vm3, %v387_v60, %v389_v54  ;;  %vm1905_vm0 = vcmp.eq.s32.totalorder %v238_v5, 1  ;;  %vm2279_vm3 = vcmask 130048  }
  0xb5   :  { %1363 = vmatprep.subr.msk.mxu1 %vm1868_vm4, %v394_v2  ;;  %v2345_v16 = vsel %vm1905_vm0, 4294967295, %v2344_v16  ;;  %v617_v2 = vld [vmem:[%s2249_s3] sm:$0xff]  ;;  %v2365_v5 = vmov 0 }
  0xb6   :  { %1364 = vmatpush1.msk.msra.mxu1 %vm1874_vm5, %v393_v1 }
  0xb7   :  { %v315_v6 = vpop.permute.xlu0 %314  ;;  %721 = vmatprep.subr.mxu1 %v1573_v13  ;;  %v2346_v13 = vmov 0 }
  0xb8   :  { %v257_v7 = vpop.permute.xlu1 %256  ;;  %v325_v9 = vsel %vm2343_vm14, %v315_v6, %v317_v52  ;;  %722 = vmatpush1.msra.mxu1 %v1559_v12  ;;  %v2347_v13 = vsel %vm1913_vm13, 4294967295, %v2346_v13  ;;  %vm80_vm14 = vmand %vm1830_vm11, %vm2348_vm12  ;;  %vm2351_vm11 = vcmp.lt.s32.totalorder %v1655_v24, 16 }
  0xb9   :  { %1350 = vmatpush1.msk.msra.mxu0 %vm1889_vm7, %v325_v9  ;;  %v267_v25 = vsel %vm2277_vm8, %v257_v7, %v259_v61  ;;  %vm1927_vm7 = vcmp.eq.s32.totalorder %v180_v19, 1  ;;  %vm82_vm12 = vmand %vm80_vm14, %vm2351_vm11  ;;  %vm2356_vm14 = vcmask 7168   ;;  %v2367_v7 = vmov 0 }
  0xba   :  { %v2350_v28 = vsel %vm1927_vm7, 4294967295, %v2349_v28  ;;  %v114_v10 = vsel %vm82_vm12, 1, %v1471_v0  ;;  %vm2357_vm11 = vmmov %vm2356_vm14  ;;  %vm2360_vm12 = vcmask 130048   ;;  %v184_v9 = vrot.slane %v1898_v18, %v1723_v50 }
  0xbb   :  { %v261_v21 = vpop.permute.xlu0 %260  ;;  %v122_v51 = vrot.slane %v114_v10, %v1664_v26  ;;  %v118_v0 = vrot.slane %v114_v10, %v1666_v27  ;;  %v2363_v26 = vmov 0  ;;  %v242_v27 = vrot.slane %v1879_v62, %v1723_v50 }
  0xbc   :  { %v1911_v22 = vpop.permute.xlu1 %202  ;;  %v268_v12 = vsel %vm2277_vm8, %v259_v61, %v261_v21  ;;  %vm1941_vm8 = vcmp.eq.s32.totalorder %v304_v29, 1  ;;  %v188_v62 = vrot.slane %v1898_v18, %v1713_v45  ;;  %v130_v29 = vrot.slane %v114_v10, %v1713_v45 }
  0xbd   :  { %1351 = vmatprep.subr.msk.mxu0 %vm1905_vm0, %v268_v12 }
  0xbe   :  { %1352 = vmatpush1.msk.msra.mxu0 %vm1913_vm13, %v267_v25  ;;  %vm1947_vm13 = vcmp.eq.s32.totalorder %v300_v33, 1  ;;  %vm2009_vm0 = vcmp.eq.s32.totalorder %v188_v62, 1  ;;  %v1157_v25 = vld [vmem:[%s2253_s7] sm:$0xff]  ;;  %s1481_s7 = smov [#allocation9]  }
  0xbf   :  { %v201_v17 = vpop.permute.xlu0 %200  ;;  %v2355_v37 = vsel %vm1947_vm13, 4294967295, %v2354_v37  ;;  %s1323_s13 = sshll.u32 %s1481_s7, 4  ;;  %s1324_s13 = int_to_ptr.vmem [resolvable:$true] %s1323_s13 }
  0xc0   :  { %v323_v32 = vpop.permute.xlu1 %322  ;;  %v210_v36 = vsel %vm2279_vm3, %v201_v17, %v1911_v22  ;;  %vm1959_vm3 = vcmp.eq.s32.totalorder %v176_v39, 1  ;;  %s1446_s14 = scalar_lea.vmem %s1324_s13, 512  ;;  %p1451_p6 = scmp.lt.s32.totalorder %s1324_s13, %s1324_s13 }
  0xc1   :  { %1353 = vmatprep.subr.msk.mxu0 %vm1927_vm7, %v210_v36  ;;  %v2359_v47 = vsel %vm1959_vm3, 4294967295, %v2358_v47  ;;  %vm1974_vm7 = vcmp.eq.s32.totalorder %v118_v0, 1  ;;  %p1447_p5 = scmp.ne.s32.totalorder %s1324_s13, %s1446_s14  ;;  %p1452_p7 = scmp.lt.s32.totalorder %s1446_s14, %s1446_s14 }
  0xc2   :  { %v2364_v26 = vsel %vm1974_vm7, 4294967295, %v2363_v26 }
  0xc3   :  { %v321_v11 = vpop.permute.xlu0 %320  ;;  %p1453_p8 = por %p1452_p7, %p1451_p6 }
  0xc4   :  { %v143_v41 = vpop.permute.xlu1 %142  ;;  %v327_v24 = vsel %vm2356_vm14, %v1834_v42, %v321_v11  ;;  %v328_v46 = vsel %vm2357_vm11, %v321_v11, %v323_v32  ;;  %vm2282_vm14 = vcmask 138240   ;;  %vm1968_vm11 = vcmp.eq.s32.totalorder %v122_v51, 1 }
  0xc5   :  { %1365 = vmatprep.subr.msk.mxu1 %vm1941_vm8, %v328_v46  ;;  %v2362_v55 = vsel %vm1968_vm11, 4294967295, %v2361_v55  ;;  %v126_v32 = vrot.slane %v114_v10, %v1723_v50  ;;  %v2379_v11 = vmov 0  ;;  %p1454_p9 = pnand %p1453_p8, %p1447_p5 }
  0xc6   :  { %1366 = vmatpush1.msk.msra.mxu1 %vm1947_vm13, %v327_v24  ;;  %vm2381_vm13 = vcmask 138240  }
  0xc7   :  { %v199_v52 = vpop.permute.xlu0 %198 }
  0xc8   :  { %v263_v54 = vpop.permute.xlu1 %262  ;;  %v209_v42 = vsel %vm2360_vm12, %v199_v52, %v201_v17  ;;  %vm2286_vm12 = vcmask 588800  }
  0xc9   :  { %1354 = vmatpush1.msk.msra.mxu0 %vm1959_vm3, %v209_v42  ;;  %vm1989_vm3 = vcmp.eq.s32.totalorder %v246_v56, 1 }
  0xca   :  { %v2366_v5 = vsel %vm1989_vm3, 4294967295, %v2365_v5 }
  0xcb   :  { %v145_v60 = vpop.permute.xlu0 %144 }
  0xcc   :  { %v141_v58 = vpop.permute.xlu1 %140  ;;  %v152_v1 = vsel %vm2282_vm14, %v143_v41, %v145_v60 }
  0xcd   :  { %v151_v61 = vsel %vm2282_vm14, %v141_v58, %v143_v41  ;;  %1355 = vmatprep.subr.msk.mxu0 %vm1968_vm11, %v152_v1  ;;  %vm1995_vm14 = vcmp.eq.s32.totalorder %v242_v27, 1  ;;  %vm2369_vm11 = vcmask 121856  }
  0xce   :  { %1356 = vmatpush1.msk.msra.mxu0 %vm1974_vm7, %v151_v61  ;;  %v2368_v7 = vsel %vm1995_vm14, 4294967295, %v2367_v7  ;;  %vm2370_vm7 = vmmov %vm2369_vm11 }
  0xcf   :  { %v265_v6 = vpop.permute.xlu0 %264  ;;  %1337 = vmatmul.mubr.msk.f32.vlgmr.msra.gmra.mxu0 %vm2286_vm12, %v617_v2  ;;  %v269_v12 = vsel %vm2370_vm7, %v261_v21, %v263_v54  ;;  %vm2014_vm12 = vcmp.eq.s32.totalorder %v184_v9, 1  ;;  %vm2375_vm7 = vcmask 130048  }
  0xd0   :  { %v207_v8 = vpop.permute.xlu1 %206  ;;  %v270_v19 = vsel %vm2369_vm11, %v263_v54, %v265_v6  ;;  %1231 = vmatprep.mubr.f32.mxu0 %v1480_v15  ;;  %vm2376_vm11 = vmmov %vm2375_vm7 }
  0xd1   :  { %1367 = vmatprep.subr.msk.mxu1 %vm1989_vm3, %v270_v19  ;;  %vm2030_vm3 = vcmp.eq.s32.totalorder %v126_v32, 1 }
  0xd2   :  { %1368 = vmatpush1.msk.msra.mxu1 %vm1995_vm14, %v269_v12  ;;  %vm2026_vm14 = vcmp.eq.s32.totalorder %v130_v29, 1  ;;  %v2380_v11 = vsel %vm2030_vm3, 4294967295, %v2379_v11 }
  0xd3   :  { %v205_v17 = vpop.permute.xlu0 %204 }
  0xd4   :  { %v211_v21 = vsel %vm2375_vm7, %v1911_v22, %v205_v17  ;;  %v212_v33 = vsel %vm2376_vm11, %v205_v17, %v207_v8  ;;  %v149_v36 = vpop.permute.xlu1 %148  ;;  %vm2382_vm7 = vmmov %vm2381_vm13  ;;  %vm2383_vm11 = vcmask 588800  }
  0xd5   :  { %1369 = vmatprep.subr.msk.mxu1 %vm2009_vm0, %v212_v33 }
  0xd6   :  { %1370 = vmatpush1.msk.msra.mxu1 %vm2014_vm12, %v211_v21 }
  0xd7   :  { %v147_v39 = vpop.permute.xlu0 %146 }
  0xd8   :  { %v153_v50 = vsel %vm2381_vm13, %v145_v60, %v147_v39  ;;  %v154_v22 = vsel %vm2382_vm7, %v147_v39, %v149_v36  ;;  %vm2384_vm13 = vcmask 908288  }
  0xd9   :  { %1371 = vmatprep.subr.msk.mxu1 %vm2026_vm14, %v154_v22  ;;  %v811_v22 = vld [vmem:[%s2252_s6] sm:$0xff]  ;;  %vm2385_vm7 = vmmov %vm2384_vm13 }
  0xda   :  { %1372 = vmatpush1.msk.msra.mxu1 %vm2030_vm3, %v153_v50  ;;  %v1053_v50 = vld [vmem:[#allocation3 + $0x18] sm:$0xff]  ;;  %vm2387_vm3 = vmmov %vm2385_vm7 }
  0xdb   :  { %1338 = vmatmul.mubr.msk.f32.vlgmr.msra.gmra.mxu1 %vm2383_vm11, %v617_v2  ;;  %vm2386_vm11 = vmmov %vm2385_vm7 }
  0xdc   :  { %1302 = vmatprep.mubr.f32.mxu1 %v1480_v15  ;;  %v801_v15 = vld [vmem:[%s2251_s5] sm:$0xff] }
  0xe4   :  { %v622_v24 = vpop.permute.xlu0 %621 }
 0x18f   :  { %v694_v41 = vpop.f32.mrf.mxu0 }
 0x190   :  { %v695_v46 = vadd.f32 %v694_v41, %v622_v24  ;;  %v933_v41 = vld [vmem:[#allocation3 + $0x28] sm:$0xff] }
 0x191   :  { %v696_v10 = vpop.f32.mrf.mxu0 }
 0x192   :  { %v697_v51 = vadd.f32 %v696_v10, %v622_v24  ;;  %v770_v52 = vmax.f32 %v695_v46, 0.0 }
 0x194   :  { %v771_v54 = vmax.f32 %v697_v51, 0.0 }
 0x196   :  { %v774_v60 = vadd.f32 %v771_v54, %v770_v52 }
 0x19b   :  { %v765_v0 = vpop.f32.mrf.mxu1 }
 0x19c   :  { %v766_v42 = vadd.f32 %v765_v0, %v622_v24 }
 0x19d   :  { %v767_v56 = vpop.f32.mrf.mxu1 }
 0x19e   :  { %v772_v58 = vmax.f32 %v766_v42, 0.0  ;;  %v768_v27 = vadd.f32 %v767_v56, %v622_v24 }
 0x1a0   :  { %v775_v61 = vadd.f32 %v774_v60, %v772_v58  ;;  %v773_v1 = vmax.f32 %v768_v27, 0.0 }
 0x1a2   :  { %v776_v62 = vadd.f32 %v775_v61, %v773_v1 }
 0x1a4   :  { %777 = vadd.xlane.f32.xlu1 %v776_v62 }
 0x1b5   :  { %804 = vperm.xlu1 %1419, %v801_v15  }
 0x1b9   :  { %1103 = vrot.lane.b32.xlu1 %v1053_v50, %s1472_s18 }
 0x1bd   :  { %1031 = vrot.lane.b32.xlu1 %v1053_v50, %s1474_s1 }
 0x1c1   :  { %907 = vrot.lane.b32.xlu1 %v933_v41, %s1477_s24 }
 0x22d   :  { %v778_v2 = vpop.xlane.xlu1 %777 }
 0x22e   :  { %v780_v6 = vmul.f32 0.001953125, %v778_v2 }
 0x230   :  { %v781_v8 = vsub.f32 %v770_v52, %v780_v6  ;;  %v782_v9 = vsub.f32 %v771_v54, %v780_v6  ;;  %v783_v19 = vsub.f32 %v772_v58, %v780_v6  ;;  %v784_v12 = vsub.f32 %v773_v1, %v780_v6 }
 0x231   :  { %v805_v52 = vpop.permute.xlu1 %804 }
 0x232   :  { %v785_v29 = vmul.f32 %v781_v8, %v781_v8  ;;  %v786_v17 = vmul.f32 %v782_v9, %v782_v9  ;;  %v787_v32 = vmul.f32 %v783_v19, %v783_v19  ;;  %v788_v33 = vmul.f32 %v784_v12, %v784_v12 }
 0x234   :  { %v789_v21 = vadd.f32 %v786_v17, %v785_v29 }
 0x236   :  { %v790_v36 = vadd.f32 %v789_v21, %v787_v32 }
 0x238   :  { %v791_v39 = vadd.f32 %v790_v36, %v788_v33 }
 0x23a   :  { %792 = vadd.xlane.f32.xlu0 %v791_v39 }
 0x250   :  { %814 = vperm.xlu0 %1418, %v811_v22  }
 0x254   :  { %1067 = vrot.lane.b32.xlu0 %v1053_v50, %s1473_s0 }
 0x258   :  { %995 = vrot.lane.b32.xlu0 %v1053_v50, %s1475_s22 }
 0x25c   :  { %943 = vrot.lane.b32.xlu0 %v933_v41, %s1476_s23 }
 0x260   :  { %871 = vrot.lane.b32.xlu0 %v933_v41, %s1478_s25 }
 0x2c3   :  { %v793_v10 = vpop.xlane.xlu0 %792 }
 0x2c4   :  { %v794_v24 = vmul.f32 0.001953125, %v793_v10 }
 0x2c6   :  { %v795_v46 = vadd.f32 1e-05, %v794_v24 }
 0x2c8   :  { %1424 = vrsqrt.f32 %v795_v46 }
 0x2cb   :  { %v815_v1 = vpop.permute.xlu0 %814 }
 0x2d5   :  { %v1425_v51 = vpop.eup %1424 }
 0x2d6   :  { %v797_v54 = vmul.f32 %v1425_v51, %v781_v8  ;;  %v798_v0 = vmul.f32 %v1425_v51, %v782_v9  ;;  %v799_v42 = vmul.f32 %v1425_v51, %v783_v19  ;;  %v800_v56 = vmul.f32 %v1425_v51, %v784_v12  ;;  %v1158_v8 = vld [vmem:[%s2254_s8] sm:$0xff]  ;;  %v1068_v9 = vpop.permute.xlu0 %1067  ;;  %v1104_v12 = vpop.permute.xlu1 %1103 }
 0x2d8   :  { %v807_v58 = vmul.f32 %v805_v52, %v797_v54  ;;  %v808_v60 = vmul.f32 %v805_v52, %v798_v0  ;;  %v809_v27 = vmul.f32 %v805_v52, %v799_v42  ;;  %v810_v61 = vmul.f32 %v805_v52, %v800_v56 }
 0x2da   :  { %v2055_v62 = vadd.f32 %v815_v1, %v807_v58  ;;  %v2057_v15 = vadd.f32 %v815_v1, %v808_v60  ;;  %v2059_v2 = vadd.f32 %v815_v1, %v809_v27  ;;  %v2061_v6 = vadd.f32 %v815_v1, %v810_v61  ;;  %v996_v19 = vpop.permute.xlu0 %995  ;;  %v1032_v17 = vpop.permute.xlu1 %1031 }
 0x2dc   :  { %1101 = vrot.lane.b32.xlu0 %v2061_v6, %s1472_s18  ;;  %1097 = vrot.lane.b32.xlu1 %v2057_v15, %s1472_s18 }
 0x2de   :  { %v944_v29 = vpop.permute.xlu0 %943  ;;  %v2133_v21 = vpop.permute.xlu1 %907 }
 0x2e0   :  { %1099 = vrot.lane.b32.xlu1 %v2059_v2, %s1472_s18  ;;  %1095 = vrot.lane.b32.xlu0 %v2055_v62, %s1472_s18 }
 0x2e2   :  { %v2131_v32 = vpop.permute.xlu0 %871 }
 0x2e4   :  { %1061 = vrot.lane.b32.xlu1 %v2057_v15, %s1473_s0  ;;  %1063 = vrot.lane.b32.xlu0 %v2059_v2, %s1473_s0 }
 0x2e8   :  { %1065 = vrot.lane.b32.xlu1 %v2061_v6, %s1473_s0  ;;  %1025 = vrot.lane.b32.xlu0 %v2057_v15, %s1474_s1 }
 0x2ec   :  { %1029 = vrot.lane.b32.xlu0 %v2061_v6, %s1474_s1  ;;  %1059 = vrot.lane.b32.xlu1 %v2055_v62, %s1473_s0 }
 0x2f0   :  { %1027 = vrot.lane.b32.xlu1 %v2059_v2, %s1474_s1  ;;  %1023 = vrot.lane.b32.xlu0 %v2055_v62, %s1474_s1 }
 0x2f4   :  { %989 = vrot.lane.b32.xlu1 %v2057_v15, %s1475_s22  ;;  %991 = vrot.lane.b32.xlu0 %v2059_v2, %s1475_s22 }
 0x2f8   :  { %993 = vrot.lane.b32.xlu1 %v2061_v6, %s1475_s22  ;;  %945 = vrot.lane.b32.xlu0 %v2055_v62, %s1476_s23 }
 0x2fc   :  { %987 = vrot.lane.b32.xlu1 %v2055_v62, %s1475_s22  ;;  %949 = vrot.lane.b32.xlu0 %v2059_v2, %s1476_s23 }
 0x300   :  { %947 = vrot.lane.b32.xlu1 %v2057_v15, %s1476_s23  ;;  %911 = vrot.lane.b32.xlu0 %v2057_v15, %s1477_s24 }
 0x304   :  { %951 = vrot.lane.b32.xlu1 %v2061_v6, %s1476_s23  ;;  %915 = vrot.lane.b32.xlu0 %v2061_v6, %s1477_s24 }
 0x308   :  { %909 = vrot.lane.b32.xlu1 %v2055_v62, %s1477_s24  ;;  %873 = vrot.lane.b32.xlu0 %v2055_v62, %s1478_s25 }
 0x30c   :  { %913 = vrot.lane.b32.xlu1 %v2059_v2, %s1477_s24  ;;  %877 = vrot.lane.b32.xlu0 %v2059_v2, %s1478_s25 }
 0x310   :  { %875 = vrot.lane.b32.xlu1 %v2057_v15, %s1478_s25  ;;  %839 = vrot.lane.b32.xlu0 %v2057_v15, %s1479_s26 }
 0x314   :  { %879 = vrot.lane.b32.xlu1 %v2061_v6, %s1478_s25  ;;  %843 = vrot.lane.b32.xlu0 %v2061_v6, %s1479_s26 }
 0x318   :  { %1161 = vperm.xlu0 %1418, %v1158_v8   ;;  %837 = vrot.lane.b32.xlu1 %v2055_v62, %s1479_s26 }
 0x31c   :  { %841 = vrot.lane.b32.xlu1 %v2059_v2, %s1479_s26 }
 0x320   :  { %835 = vrot.lane.b32.xlu1 %v933_v41, %s1479_s26 }
 0x34e   :  { %v1102_v33 = vpop.permute.xlu0 %1101  ;;  %v1098_v36 = vpop.permute.xlu1 %1097 }
 0x34f   :  { %v1108_v39 = vsel %vm2384_vm13, %v1102_v33, %v1104_v12 }
 0x350   :  { %1389 = vmatprep.subr.msk.mxu1 %vm1746_vm6, %v1108_v39  ;;  %vm2388_vm6 = vcmask 916480  }
 0x351   :  { %vm2389_vm13 = vmmov %vm2388_vm6 }
 0x352   :  { %v1096_v50 = vpop.permute.xlu0 %1095  ;;  %v1100_v22 = vpop.permute.xlu1 %1099 }
 0x353   :  { %v1105_v41 = vsel %vm2385_vm7, %v1096_v50, %v1098_v36  ;;  %v1106_v10 = vsel %vm2386_vm11, %v1098_v36, %v1100_v22  ;;  %v1107_v24 = vsel %vm2387_vm3, %v1100_v22, %v1102_v33  ;;  %vm2390_vm3 = vmmov %vm2388_vm6  ;;  %vm2395_vm7 = vnez %v2322_v40 }
 0x354   :  { %1373 = vmatprep.subr.msk.mxu0 %vm1684_vm15, %v1106_v10  ;;  %1390 = vmatpush1.msk.msra.mxu1 %vm1752_vm2, %v1107_v24  ;;  %vm2391_vm2 = vnez %v2318_v31  ;;  %vm2392_vm15 = vcmask 924672  }
 0x355   :  { %1374 = vmatpush1.msk.msra.mxu0 %vm1688_vm1, %v1105_v41  ;;  %vm2393_vm1 = vmmov %vm2390_vm3 }
 0x356   :  { %v1064_v46 = vpop.permute.xlu0 %1063  ;;  %v1062_v59 = vpop.permute.xlu1 %1061  ;;  %vm2396_vm11 = vmmov %vm2392_vm15 }
 0x357   :  { %v1070_v51 = vsel %vm2388_vm6, %v1062_v59, %v1064_v46 }
 0x358   :  { %1375 = vmatprep.subr.msk.mxu0 %vm1707_vm9, %v1070_v51  ;;  %vm2394_vm9 = vnez %v2302_v49 }
 0x35a   :  { %v1026_v52 = vpop.permute.xlu0 %1025  ;;  %v1066_v54 = vpop.permute.xlu1 %1065 }
 0x35b   :  { %v1071_v0 = vsel %vm2389_vm13, %v1064_v46, %v1066_v54  ;;  %v1072_v34 = vsel %vm2390_vm3, %v1066_v54, %v1068_v9  ;;  %vm2399_vm13 = vnez %v2304_v53  ;;  %vm2400_vm3 = vnez %v2326_v44 }
 0x35c   :  { %1391 = vmatprep.subr.msk.mxu1 %vm1801_vm10, %v1072_v34  ;;  %vm2397_vm10 = vmmov %vm2396_vm11 }
 0x35d   :  { %1392 = vmatpush1.msk.msra.mxu1 %vm2391_vm2, %v1071_v0  ;;  %vm2398_vm6 = vmmov %vm2397_vm10  ;;  %vm2401_vm2 = vnez %v2310_v4 }
 0x35e   :  { %v1030_v35 = vpop.permute.xlu0 %1029  ;;  %v1060_v63 = vpop.permute.xlu1 %1059 }
 0x35f   :  { %v1036_v42 = vsel %vm2392_vm15, %v1030_v35, %v1032_v17  ;;  %v1069_v56 = vsel %vm2393_vm1, %v1060_v63, %v1062_v59  ;;  %vm2402_vm15 = vcmask 1039360   ;;  %vm2403_vm1 = vnez %v2312_v14 }
 0x360   :  { %1376 = vmatpush1.msk.msra.mxu0 %vm2394_vm9, %v1069_v56  ;;  %1393 = vmatprep.subr.msk.mxu1 %vm2395_vm7, %v1036_v42  ;;  %vm2404_vm9 = vmmov %vm2402_vm15 }
 0x361   :  { %vm2405_vm7 = vmmov %vm2404_vm9 }
 0x362   :  { %v1024_v43 = vpop.permute.xlu0 %1023  ;;  %v1028_v58 = vpop.permute.xlu1 %1027 }
 0x363   :  { %v1033_v30 = vsel %vm2396_vm11, %v1024_v43, %v1026_v52  ;;  %v1034_v60 = vsel %vm2397_vm10, %v1026_v52, %v1028_v58  ;;  %v1035_v31 = vsel %vm2398_vm6, %v1028_v58, %v1030_v35  ;;  %vm2406_vm11 = vmmov %vm2405_vm7  ;;  %vm2407_vm10 = vnez %v2314_v23 }
 0x364   :  { %1377 = vmatprep.subr.msk.mxu0 %vm2399_vm13, %v1034_v60  ;;  %1394 = vmatpush1.msk.msra.mxu1 %vm2400_vm3, %v1035_v31  ;;  %vm2410_vm6 = vnez %v2331_v48  ;;  %vm2411_vm13 = vnez %v2342_v3 }
 0x365   :  { %1378 = vmatpush1.msk.msra.mxu0 %vm2401_vm2, %v1033_v30 }
 0x366   :  { %v992_v49 = vpop.permute.xlu0 %991  ;;  %v990_v40 = vpop.permute.xlu1 %989 }
 0x367   :  { %v998_v27 = vsel %vm2402_vm15, %v990_v40, %v992_v49  ;;  %vm2414_vm15 = vnez %v2355_v37 }
 0x368   :  { %1379 = vmatprep.subr.msk.mxu0 %vm2403_vm1, %v998_v27  ;;  %vm2415_vm1 = vcmask 121856  }
 0x36a   :  { %v946_v61 = vpop.permute.xlu0 %945  ;;  %v994_v1 = vpop.permute.xlu1 %993 }
 0x36b   :  { %v999_v8 = vsel %vm2404_vm9, %v992_v49, %v994_v1  ;;  %v1000_v53 = vsel %vm2405_vm7, %v994_v1, %v996_v19  ;;  %vm2416_vm9 = vmmov %vm2415_vm1  ;;  %vm2417_vm7 = vnez %v2345_v16 }
 0x36c   :  { %1395 = vmatprep.subr.msk.mxu1 %vm1868_vm4, %v1000_v53  ;;  %vm2408_vm4 = vcmask 7168  }
 0x36d   :  { %1396 = vmatpush1.msk.msra.mxu1 %vm1874_vm5, %v999_v8  ;;  %vm2409_vm5 = vmmov %vm2408_vm4 }
 0x36e   :  { %v950_v4 = vpop.permute.xlu0 %949  ;;  %1260 = vmatprep.subr.mxu1 %v2061_v6  ;;  %v988_v44 = vpop.permute.xlu1 %987  ;;  %v953_v19 = vsel %vm2409_vm5, %v944_v29, %v946_v61  ;;  %vm2412_vm3 = vmmov %vm2408_vm4  ;;  %vm2422_vm5 = vnez %v2368_v7 }
 0x36f   :  { %v997_v9 = vsel %vm2406_vm11, %v988_v44, %v990_v40  ;;  %1261 = vmatpush1.msra.mxu1 %v2059_v2  ;;  %vm2413_vm2 = vmmov %vm2412_vm3  ;;  %vm2418_vm11 = vnez %v2347_v13 }
 0x370   :  { %1380 = vmatpush1.msk.msra.mxu0 %vm2407_vm10, %v997_v9  ;;  %vm2419_vm10 = vmmov %vm2415_vm1 }
 0x371   :  { %1189 = vmatprep.subr.mxu0 %v2057_v15 }
 0x372   :  { %v912_v14 = vpop.permute.xlu0 %911  ;;  %1190 = vmatpush1.msra.mxu0 %v2055_v62  ;;  %v948_v57 = vpop.permute.xlu1 %947 }
 0x373   :  { %v954_v20 = vsel %vm2408_vm4, %v946_v61, %v948_v57  ;;  %v955_v15 = vsel %vm2413_vm2, %v948_v57, %v950_v4  ;;  %vm2421_vm4 = vnez %v2366_v5  ;;  %vm2426_vm2 = vnez %v2359_v47 }
 0x374   :  { %1381 = vmatprep.subr.msk.mxu0 %vm2410_vm6, %v954_v20  ;;  %vm2423_vm6 = vcmask 130048  }
 0x375   :  { %1382 = vmatpush1.msk.msra.mxu0 %vm2411_vm13, %v953_v19  ;;  %vm2424_vm13 = vmmov %vm2423_vm6 }
 0x376   :  { %v916_v2 = vpop.permute.xlu0 %915  ;;  %v952_v6 = vpop.permute.xlu1 %951 }
 0x377   :  { %v956_v23 = vsel %vm2412_vm3, %v950_v4, %v952_v6  ;;  %vm2425_vm3 = vnez %v2350_v28 }
 0x378   :  { %1397 = vmatprep.subr.msk.mxu1 %vm1941_vm8, %v956_v23  ;;  %vm2420_vm8 = vmmov %vm2415_vm1 }
 0x379   :  { %1398 = vmatpush1.msk.msra.mxu1 %vm2414_vm15, %v955_v15  ;;  %vm2427_vm15 = vmmov %vm2423_vm6 }
 0x37a   :  { %v910_v62 = vpop.permute.xlu1 %909  ;;  %v874_v3 = vpop.permute.xlu0 %873 }
 0x37b   :  { %v917_v48 = vsel %vm2415_vm1, %v2133_v21, %v910_v62  ;;  %v918_v12 = vsel %vm2416_vm9, %v910_v62, %v912_v14  ;;  %v881_v16 = vsel %vm2424_vm13, %v2131_v32, %v874_v3  ;;  %vm2428_vm1 = vmmov %vm2423_vm6  ;;  %vm2429_vm9 = vcmask 138240  }
 0x37c   :  { %1383 = vmatprep.subr.msk.mxu0 %vm2417_vm7, %v918_v12  ;;  %vm2430_vm7 = vnez %v2362_v55 }
 0x37d   :  { %1384 = vmatpush1.msk.msra.mxu0 %vm2418_vm11, %v917_v48  ;;  %vm2431_vm11 = vmmov %vm2429_vm9 }
 0x37e   :  { %v914_v29 = vpop.permute.xlu1 %913  ;;  %v878_v37 = vpop.permute.xlu0 %877 }
 0x37f   :  { %v919_v38 = vsel %vm2419_vm10, %v912_v14, %v914_v29  ;;  %v920_v17 = vsel %vm2420_vm8, %v914_v29, %v916_v2  ;;  %vm2432_vm10 = vmmov %vm2429_vm9 }
 0x380   :  { %1399 = vmatprep.subr.msk.mxu1 %vm2421_vm4, %v920_v17  ;;  %vm2435_vm8 = vmmov %vm2429_vm9  ;;  %vm2436_vm4 = vnez %v2364_v26 }
 0x381   :  { %1400 = vmatpush1.msk.msra.mxu1 %vm2422_vm5, %v919_v38 }
 0x382   :  { %v876_v21 = vpop.permute.xlu1 %875  ;;  %v840_v36 = vpop.permute.xlu0 %839 }
 0x383   :  { %v882_v33 = vsel %vm2423_vm6, %v874_v3, %v876_v21  ;;  %v883_v7 = vsel %vm2428_vm1, %v876_v21, %v878_v37 }
 0x384   :  { %1385 = vmatprep.subr.msk.mxu0 %vm2425_vm3, %v882_v33 }
 0x385   :  { %1386 = vmatpush1.msk.msra.mxu0 %vm2426_vm2, %v881_v16 }
 0x386   :  { %v880_v13 = vpop.permute.xlu1 %879  ;;  %v844_v28 = vpop.permute.xlu0 %843 }
 0x387   :  { %v884_v5 = vsel %vm2427_vm15, %v878_v37, %v880_v13 }
 0x388   :  { %1401 = vmatprep.subr.msk.mxu1 %vm2009_vm0, %v884_v5  ;;  %vm2433_vm0 = vnez %v2380_v11 }
 0x389   :  { %1402 = vmatpush1.msk.msra.mxu1 %vm2014_vm12, %v883_v7  ;;  %vm2434_vm12 = vcmask 588800  }
 0x38a   :  { %v838_v39 = vpop.permute.xlu1 %837  ;;  %vm2437_vm5 = vmmov %vm2434_vm12 }
 0x38b   :  { %v846_v32 = vsel %vm2429_vm9, %v838_v39, %v840_v36 }
 0x38c   :  { %1387 = vmatprep.subr.msk.mxu0 %vm2430_vm7, %v846_v32 }
 0x38e   :  { %v842_v47 = vpop.permute.xlu1 %841 }
 0x38f   :  { %v847_v50 = vsel %vm2431_vm11, %v840_v36, %v842_v47  ;;  %v848_v22 = vsel %vm2432_vm10, %v842_v47, %v844_v28 }
 0x390   :  { %1403 = vmatprep.subr.msk.mxu1 %vm2026_vm14, %v848_v22 }
 0x391   :  { %1404 = vmatpush1.msk.msra.mxu1 %vm2433_vm0, %v847_v50 }
 0x392   :  { %1340 = vmatmul.mubr.msk.f32.vlgmr.msra.gmra.mxu1 %vm2434_vm12, %v1157_v25  ;;  %v836_v55 = vpop.permute.xlu1 %835 }
 0x393   :  { %v845_v18 = vsel %vm2435_vm8, %v836_v55, %v838_v39  ;;  %v1162_v41 = vpop.permute.xlu0 %1161 }
 0x394   :  { %1388 = vmatpush1.msk.msra.mxu0 %vm2436_vm4, %v845_v18 }
 0x395   :  { %1339 = vmatmul.mubr.msk.f32.vlgmr.msra.gmra.mxu0 %vm2437_vm5, %v1157_v25 }
 0x452   :  { %v1304_v10 = vpop.f32.mrf.mxu1 }
 0x453   :  { %v1305_v24 = vadd.f32 %v1304_v10, %v1162_v41 }
 0x454   :  { %v1306_v46 = vpop.f32.mrf.mxu1 }
 0x455   :  { %v1311_v59 = vmax.f32 %v1305_v24, 0.0  ;;  %v1307_v45 = vadd.f32 %v1306_v46, %v1162_v41  ;;  %v1233_v51 = vpop.f32.mrf.mxu0 }
 0x456   :  { %v1234_v52 = vadd.f32 %v1233_v51, %v1162_v41 }
 0x457   :  { %1316 = vst [vmem:[#allocation9 + $0x10] sm:$0xff] %v1311_v59  ;;  %v1312_v11 = vmax.f32 %v1307_v45, 0.0  ;;  %v1235_v54 = vpop.f32.mrf.mxu0 }
 0x458   :  { %v1309_v0 = vmax.f32 %v1234_v52, 0.0  ;;  %v1236_v34 = vadd.f32 %v1235_v54, %v1162_v41 }
 0x459   :  { %1317 = vst [vmem:[#allocation9 + $0x18] sm:$0xff] %v1312_v11 }
 0x45a   :  { %1313 = vst [vmem:[#allocation9] sm:$0xff] %v1309_v0  ;;  %v1310_v26 = vmax.f32 %v1236_v34, 0.0 }
 0x45c   :  { %1314 = vst [vmem:[#allocation9 + $0x8] sm:$0xff] %v1310_v26 }
 0x45d   :  { %1457 = shalt.err (!%p1454_p9)
}
 0x45e   :  { %s1482_s15 = smov 256  }
 0x45f   :  { %1329 = dma.vmem_to_hbm [thread:$0]  %s1324_s13, 512, %s2255_s9, [#allocation8], %s1482_s15, %s1482_s15, %s1478_s25  }
 0x460   :  { %1468 = dma.done.wait [#allocation8], 512  }
 0x461   :  { %1469 = vsyncadd [#allocation8], 4294966784 }
 0x462   :  { %1333 = vsyncpa [#allocation7], 1 }
 0x463   :  { %1334 = vsyncpa [#allocation8], 1 }

</bundles_post_ra>
